<compile_context>
chip_gen: v7x
topology: tpu7x:2x2x1
jax: 0.10.0
libtpu: 0.0.40
codegen_flags: <defaults>
</compile_context>

<pallas_src>
import math

import jax
import jax.numpy as jnp
from jax import lax
from jax.experimental import pallas as pl
from jax.experimental.pallas import tpu as pltpu


def _bert_linear_kernel(x_ref, w_ref, b_ref, gamma_ref, beta_ref, o_ref):
    # Linear: native-dtype operands straight into the MXU, f32 accumulate.
    y = jnp.dot(x_ref[...], w_ref[...], preferred_element_type=jnp.float32)
    y = y + b_ref[...].astype(jnp.float32)

    # GELU (erf formulation, exactly as the reference `gelu`); 1/sqrt(2) folded to a constant.
    y = y * 0.5 * (1.0 + lax.erf(y * 0.7071067811865476))

    # BertLayerNorm over the last axis (biased variance, eps=1e-12).
    # Single-pass stats: var = E[y^2] - E[y]^2 (clamped >= 0 for fp safety), rsqrt on the EUP.
    mean = jnp.mean(y, axis=-1, keepdims=True)
    mean_sq = jnp.mean(y * y, axis=-1, keepdims=True)
    var = jnp.maximum(mean_sq - mean * mean, 0.0)
    y = (y - mean) * lax.rsqrt(var + 1e-12)

    o_ref[...] = (gamma_ref[...].astype(jnp.float32) * y
                  + beta_ref[...].astype(jnp.float32)).astype(o_ref.dtype)


def _round_up(a, b):
    return -(-a // b) * b


def bert_linear(x, weight, bias, ln_weight, ln_bias, *, tm=256,
                vmem_budget_bytes=28 * 1024 * 1024):
    """x: (..., input_size) -> (..., output_size). Fused Linear+GELU+LayerNorm."""
    in_size, out_size = weight.shape
    orig_shape = x.shape
    x2d = x.reshape(-1, in_size)
    M = x2d.shape[0]
    out_dtype = x.dtype

    # ---- pick the row tile under a VMEM budget (double-buffered tiles + f32 intermediates) ----
    x_b = x2d.dtype.itemsize
    w_b = weight.dtype.itemsize
    o_b = jnp.dtype(out_dtype).itemsize
    fixed = 2 * in_size * out_size * w_b + 2 * 3 * out_size * 4   # W + bias/gamma/beta buffers
    per_row = 2 * in_size * x_b + 2 * out_size * o_b + 2 * out_size * 4  # x/out tiles + f32 y
    while tm > 64 and fixed + tm * per_row > vmem_budget_bytes:
        tm //= 2
    tm = max(tm, 8)
    # TODO(synk): for very large in_size (K >~ 2048) add a K grid axis ("arbitrary") with an f32
    # accumulator scratch and do the GELU+LN epilogue under pl.when on the last K step.

    # ---- pad rows so the grid is tile-aligned; keep the grid even for 2-TC (v7x) chips ----
    m_pad = _round_up(M, tm)
    if m_pad // tm > 1 and (m_pad // tm) % 2 == 1:
        m_pad = _round_up(M, 2 * tm)
    if m_pad != M:
        x2d = jnp.pad(x2d, ((0, m_pad - M), (0, 0)))

    b2d = bias.reshape(1, out_size)
    g2d = ln_weight.reshape(1, out_size)
    beta2d = ln_bias.reshape(1, out_size)

    out2d = pl.pallas_call(
        _bert_linear_kernel,
        out_shape=jax.ShapeDtypeStruct((m_pad, out_size), out_dtype),
        grid_spec=pltpu.PrefetchScalarGridSpec(
            num_scalar_prefetch=0,
            grid=(m_pad // tm,),
            in_specs=[
                pl.BlockSpec((tm, in_size), lambda i: (i, 0)),         # x rows (tiled)
                pl.BlockSpec((in_size, out_size), lambda i: (0, 0)),   # W (full, block-invariant)
                pl.BlockSpec((1, out_size), lambda i: (0, 0)),         # bias
                pl.BlockSpec((1, out_size), lambda i: (0, 0)),         # LN gamma
                pl.BlockSpec((1, out_size), lambda i: (0, 0)),         # LN beta
            ],
            out_specs=pl.BlockSpec((tm, out_size), lambda i: (i, 0)),
        ),
        compiler_params=pltpu.CompilerParams(
            dimension_semantics=("parallel",),
            vmem_limit_bytes=64 * 1024 * 1024,
        ),
    )(x2d, weight, b2d, g2d, beta2d)

    return out2d[:M].reshape(*orig_shape[:-1], out_size)


if __name__ == "__main__":
    # Small shapes consistent with the module: batch=2, seq=8, input=32, output=64.
    batch, seq, input_size, output_size = 2, 8, 32, 64

    key = jax.random.PRNGKey(0)
    kx, kw = jax.random.split(key)

    x = jax.random.normal(kx, (batch, seq, input_size), dtype=jnp.float32)

    # Deterministic parameter init mirroring the PyTorch __init__:
    #   linear.weight ~ N(0, 0.02), linear.bias = 0, LN weight = 1, LN bias = 0.
    weight = 0.02 * jax.random.normal(kw, (input_size, output_size), dtype=jnp.float32)
    bias = jnp.zeros((output_size,), dtype=jnp.float32)
    ln_weight = jnp.ones((output_size,), dtype=jnp.float32)
    ln_bias = jnp.zeros((output_size,), dtype=jnp.float32)

    out = bert_linear(x, weight, bias, ln_weight, ln_bias)
    jax.block_until_ready(out)

    # Pure-JAX reference of the fused path (two-pass LN, exactly the PyTorch math).
    y_ref = x.reshape(-1, input_size) @ weight + bias
    y_ref = y_ref * 0.5 * (1.0 + lax.erf(y_ref / math.sqrt(2.0)))
    u = y_ref.mean(-1, keepdims=True)
    s = ((y_ref - u) ** 2).mean(-1, keepdims=True)
    y_ref = (y_ref - u) / jnp.sqrt(s + 1e-12)
    y_ref = (ln_weight * y_ref + ln_bias).reshape(batch, seq, output_size)
    assert out.shape == y_ref.shape
    assert jnp.allclose(out, y_ref, atol=1e-4, rtol=1e-4), float(jnp.max(jnp.abs(out - y_ref)))

    print("KERNEL_OK")
</pallas_src>

<mosaic_0001>
module attributes {stable_mosaic.version = 11 : i64} {
  func.func @_bert_linear_kernel(%arg0: i32, %arg1: memref<256x32xf32, #tpu.memory_space<vmem>>, %arg2: memref<32x64xf32, #tpu.memory_space<vmem>>, %arg3: memref<1x64xf32, #tpu.memory_space<vmem>>, %arg4: memref<1x64xf32, #tpu.memory_space<vmem>>, %arg5: memref<1x64xf32, #tpu.memory_space<vmem>>, %arg6: memref<256x64xf32, #tpu.memory_space<vmem>>) attributes {dimension_semantics = [#tpu.dimension_semantics<parallel>], iteration_bounds = array<i64: 1>, scalar_prefetch = 0 : i64, scratch_operands = 0 : i64, tpu.core_type = #tpu.core_type<tc>, window_params = [{transform_indices = @transform_0, window_bounds = array<i64: 256, 32>}, {pipeline_mode = #tpu.pipeline_mode<synchronous>, transform_indices = @transform_1, window_bounds = array<i64: 32, 64>}, {pipeline_mode = #tpu.pipeline_mode<synchronous>, transform_indices = @transform_2, window_bounds = array<i64: 1, 64>}, {pipeline_mode = #tpu.pipeline_mode<synchronous>, transform_indices = @transform_3, window_bounds = array<i64: 1, 64>}, {pipeline_mode = #tpu.pipeline_mode<synchronous>, transform_indices = @transform_4, window_bounds = array<i64: 1, 64>}, {transform_indices = @transform_5, window_bounds = array<i64: 256, 64>}]} {
    %c0 = arith.constant 0 : index
    %c0_0 = arith.constant 0 : index
    %0 = vector.load %arg1[%c0, %c0_0] : memref<256x32xf32, #tpu.memory_space<vmem>>, vector<256x32xf32>
    %c0_1 = arith.constant 0 : index
    %c0_2 = arith.constant 0 : index
    %1 = vector.load %arg2[%c0_1, %c0_2] : memref<32x64xf32, #tpu.memory_space<vmem>>, vector<32x64xf32>
    %cst = arith.constant dense<0.000000e+00> : vector<256x64xf32>
    %2 = tpu.matmul %0, %1, %cst {dimension_numbers = #tpu.dot_dimension_numbers<[1], [0], [0], [1], [0, 0, 1, 1], [], []>} : vector<256x32xf32>, vector<32x64xf32>, vector<256x64xf32> -> vector<256x64xf32>
    %c0_3 = arith.constant 0 : index
    %c0_4 = arith.constant 0 : index
    %3 = vector.load %arg3[%c0_3, %c0_4] : memref<1x64xf32, #tpu.memory_space<vmem>>, vector<1x64xf32>
    %4 = vector.broadcast %3 : vector<1x64xf32> to vector<256x64xf32>
    %5 = arith.addf %2, %4 : vector<256x64xf32>
    %cst_5 = arith.constant 5.000000e-01 : f32
    %6 = vector.broadcast %cst_5 : f32 to vector<256x64xf32>
    %7 = arith.mulf %5, %6 : vector<256x64xf32>
    %cst_6 = arith.constant 0.707106769 : f32
    %8 = vector.broadcast %cst_6 : f32 to vector<256x64xf32>
    %9 = arith.mulf %5, %8 : vector<256x64xf32>
    %10 = math.erf %9 : vector<256x64xf32>
    %cst_7 = arith.constant 1.000000e+00 : f32
    %11 = vector.broadcast %cst_7 : f32 to vector<256x64xf32>
    %12 = arith.addf %11, %10 : vector<256x64xf32>
    %13 = arith.mulf %7, %12 : vector<256x64xf32>
    %cst_8 = arith.constant dense<0.000000e+00> : vector<256xf32>
    %14 = vector.multi_reduction <add>, %13, %cst_8 [1] : vector<256x64xf32> to vector<256xf32>
    %15 = vector.shape_cast %14 : vector<256xf32> to vector<256x1xf32>
    %cst_9 = arith.constant 6.400000e+01 : f32
    %16 = vector.broadcast %cst_9 : f32 to vector<256x1xf32>
    %17 = arith.divf %15, %16 : vector<256x1xf32>
    %18 = arith.mulf %13, %13 : vector<256x64xf32>
    %cst_10 = arith.constant dense<0.000000e+00> : vector<256xf32>
    %19 = vector.multi_reduction <add>, %18, %cst_10 [1] : vector<256x64xf32> to vector<256xf32>
    %20 = vector.shape_cast %19 : vector<256xf32> to vector<256x1xf32>
    %cst_11 = arith.constant 6.400000e+01 : f32
    %21 = vector.broadcast %cst_11 : f32 to vector<256x1xf32>
    %22 = arith.divf %20, %21 : vector<256x1xf32>
    %23 = arith.mulf %17, %17 : vector<256x1xf32>
    %24 = arith.subf %22, %23 : vector<256x1xf32>
    %cst_12 = arith.constant 0.000000e+00 : f32
    %25 = vector.broadcast %cst_12 : f32 to vector<256x1xf32>
    %26 = arith.maximumf %24, %25 : vector<256x1xf32>
    %27 = vector.broadcast %17 : vector<256x1xf32> to vector<256x64xf32>
    %28 = arith.subf %13, %27 : vector<256x64xf32>
    %cst_13 = arith.constant 9.99999996E-13 : f32
    %29 = vector.broadcast %cst_13 : f32 to vector<256x1xf32>
    %30 = arith.addf %26, %29 : vector<256x1xf32>
    %31 = math.rsqrt %30 : vector<256x1xf32>
    %32 = vector.broadcast %31 : vector<256x1xf32> to vector<256x64xf32>
    %33 = arith.mulf %28, %32 : vector<256x64xf32>
    %c0_14 = arith.constant 0 : index
    %c0_15 = arith.constant 0 : index
    %34 = vector.load %arg4[%c0_14, %c0_15] : memref<1x64xf32, #tpu.memory_space<vmem>>, vector<1x64xf32>
    %35 = vector.broadcast %34 : vector<1x64xf32> to vector<256x64xf32>
    %36 = arith.mulf %35, %33 : vector<256x64xf32>
    %c0_16 = arith.constant 0 : index
    %c0_17 = arith.constant 0 : index
    %37 = vector.load %arg5[%c0_16, %c0_17] : memref<1x64xf32, #tpu.memory_space<vmem>>, vector<1x64xf32>
    %38 = vector.broadcast %37 : vector<1x64xf32> to vector<256x64xf32>
    %39 = arith.addf %36, %38 : vector<256x64xf32>
    %c0_18 = arith.constant 0 : index
    %c0_19 = arith.constant 0 : index
    %40 = vector.load %arg6[%c0_18, %c0_19] : memref<256x64xf32, #tpu.memory_space<vmem>>, vector<256x64xf32>
    tpu.vector_store %arg6[%c0_18, %c0_19], %39 {strides = array<i32>} : memref<256x64xf32, #tpu.memory_space<vmem>>, vector<256x64xf32>,
    return
  }
  func.func @transform_0(%arg0: i32) -> (i32, i32) {
    %c0_i32 = arith.constant 0 : i32
    %c0_i32_0 = arith.constant 0 : i32
    return %arg0, %c0_i32 : i32, i32
  }
  func.func @transform_1(%arg0: i32) -> (i32, i32) {
    %c0_i32 = arith.constant 0 : i32
    %c0_i32_0 = arith.constant 0 : i32
    %c0_i32_1 = arith.constant 0 : i32
    return %c0_i32, %c0_i32_0 : i32, i32
  }
  func.func @transform_2(%arg0: i32) -> (i32, i32) {
    %c0_i32 = arith.constant 0 : i32
    %c0_i32_0 = arith.constant 0 : i32
    %c0_i32_1 = arith.constant 0 : i32
    return %c0_i32, %c0_i32_0 : i32, i32
  }
  func.func @transform_3(%arg0: i32) -> (i32, i32) {
    %c0_i32 = arith.constant 0 : i32
    %c0_i32_0 = arith.constant 0 : i32
    %c0_i32_1 = arith.constant 0 : i32
    return %c0_i32, %c0_i32_0 : i32, i32
  }
  func.func @transform_4(%arg0: i32) -> (i32, i32) {
    %c0_i32 = arith.constant 0 : i32
    %c0_i32_0 = arith.constant 0 : i32
    %c0_i32_1 = arith.constant 0 : i32
    return %c0_i32, %c0_i32_0 : i32, i32
  }
  func.func @transform_5(%arg0: i32) -> (i32, i32) {
    %c0_i32 = arith.constant 0 : i32
    %c0_i32_0 = arith.constant 0 : i32
    return %arg0, %c0_i32 : i32, i32
  }
}

</mosaic_0001>

<bundles_post_ra>
// kernel: tpu_custom_call.1
= control target key start
LH: loop header
LB: loop body
LE: loop exit
PB: predicated region body
PF: predicated region fallthrough
CT: control target
= control target key end

     0   :  { %10 = vsyncpa [#allocation3], 0  ;;  %s2532_s0 = inlined_call_operand.hbm [shape: f32[256,32], index: 0, kind: input, shape index: {}]   ;;  %s2533_s1 = inlined_call_operand.hbm [shape: f32[32,64], index: 1, kind: input, shape index: {}]   ;;  %s2534_s2 = inlined_call_operand.hbm [shape: f32[1,64], index: 2, kind: input, shape index: {}]   ;;  %s2535_s3 = inlined_call_operand.hbm [shape: f32[1,64], index: 3, kind: input, shape index: {}]   ;;  %s2536_s4 = inlined_call_operand.hbm [shape: f32[1,64], index: 4, kind: input, shape index: {}]   ;;  %s2537_s5 = inlined_call_operand.hbm [shape: f32[256,64], index: 5, kind: output, shape index: {}]  }
   0x1   :  { %11 = vsyncpa [#allocation6], 0 }
   0x2   :  { %12 = vsyncpa [#allocation9], 0 }
   0x3   :  { %13 = vsyncpa [#allocation4], 0  ;;  %s1666_s18 = smov [#allocation5]   ;;  %s1667_s20 = smov [#allocation8]  }
   0x4   :  { %s31_s19 = sshll.u32 %s1666_s18, 4  ;;  %s54_s21 = sshll.u32 %s1667_s20, 4  ;;  %s32_s19 = int_to_ptr.vmem [resolvable:$true] %s31_s19  ;;  %s1704_s21 = int_to_ptr.vmem [resolvable:$true] %s54_s21 }
   0x5   :  { %s1526_s24 = scalar_lea.hbm %s2533_s1, 512 }
   0x6   :  { %p1527_p0 = scmp.ne.s32.totalorder %s2533_s1, %s1526_s24  ;;  %p1530_p1 = scmp.lt.u32.totalorder %s1526_s24, %s2533_s1 }
   0x8   :  { %p1532_p2 = pnand %p1530_p1, %p1527_p0 }
   0xa   :  { %1535 = shalt.err (!%p1532_p2)
}
   0xb   :  { %s1536_s29 = scalar_lea.vmem %s32_s19, 512  ;;  %p1541_p4 = scmp.lt.s32.totalorder %s32_s19, %s32_s19 }
   0xc   :  { %p1537_p3 = scmp.ne.s32.totalorder %s32_s19, %s1536_s29  ;;  %p1542_p5 = scmp.lt.s32.totalorder %s1536_s29, %s1536_s29 }
   0xe   :  { %p1543_p6 = por %p1542_p5, %p1541_p4 }
  0x10   :  { %p1544_p7 = pnand %p1543_p6, %p1537_p3 }
  0x12   :  { %1547 = shalt.err (!%p1544_p7)
}
  0x13   :  { %s1668_s30 = smov 128   ;;  %s1669_s6 = smov 8  }
  0x14   :  { %37 = dma.hbm_to_vmem [thread:$0]  %s2533_s1, 512, %s32_s19, [#allocation6], %s1668_s30, %s1668_s30, %s1669_s6  }
  0x15   :  { %s1548_s11 = scalar_lea.hbm %s2535_s3, 16 }
  0x16   :  { %p1549_p8 = scmp.ne.s32.totalorder %s2535_s3, %s1548_s11  ;;  %p1552_p9 = scmp.lt.u32.totalorder %s1548_s11, %s2535_s3 }
  0x18   :  { %p1554_p10 = pnand %p1552_p9, %p1549_p8 }
  0x1a   :  { %1557 = shalt.err (!%p1554_p10)
}
  0x1b   :  { %s1558_s16 = scalar_lea.vmem %s1704_s21, 16  ;;  %s1562_s1 = scalar_lea.vmem %s1704_s21, 32 }
  0x1c   :  { %p1559_p11 = scmp.ne.s32.totalorder %s1704_s21, %s1558_s16  ;;  %p1563_p12 = scmp.lt.s32.totalorder %s1704_s21, %s1704_s21 }
  0x1d   :  { %p1564_p13 = scmp.lt.s32.totalorder %s1562_s1, %s1558_s16 }
  0x1f   :  { %p1565_p0 = por %p1564_p13, %p1563_p12 }
  0x21   :  { %p1566_p1 = pnand %p1565_p0, %p1559_p11 }
  0x23   :  { %1569 = shalt.err (!%p1566_p1)
}
  0x24   :  { %57 = dma.hbm_to_vmem [thread:$0]  %s2535_s3, 16, %s1704_s21, [#allocation9]  }
  0x25   :  { %s1670_s19 = smov [#allocation2]   ;;  %s1671_s22 = smov [#allocation7]  }
  0x26   :  { %s19_s20 = sshll.u32 %s1670_s19, 4  ;;  %s44_s23 = sshll.u32 %s1671_s22, 4  ;;  %s20_s20 = int_to_ptr.vmem [resolvable:$true] %s19_s20  ;;  %s45_s23 = int_to_ptr.vmem [resolvable:$true] %s44_s23 }
  0x27   :  { %s1570_s26 = scalar_lea.hbm %s2532_s0, 4096 }
  0x28   :  { %p1571_p2 = scmp.ne.s32.totalorder %s2532_s0, %s1570_s26  ;;  %p1574_p3 = scmp.lt.u32.totalorder %s1570_s26, %s2532_s0 }
  0x2a   :  { %p1576_p4 = pnand %p1574_p3, %p1571_p2 }
  0x2c   :  { %1579 = shalt.err (!%p1576_p4)
}
  0x2d   :  { %s1580_s3 = scalar_lea.vmem %s20_s20, 4096  ;;  %p1585_p6 = scmp.lt.s32.totalorder %s20_s20, %s20_s20 }
  0x2e   :  { %p1581_p5 = scmp.ne.s32.totalorder %s20_s20, %s1580_s3  ;;  %p1586_p7 = scmp.lt.s32.totalorder %s1580_s3, %s1580_s3 }
  0x30   :  { %p1587_p8 = por %p1586_p7, %p1585_p6 }
  0x32   :  { %p1588_p9 = pnand %p1587_p8, %p1581_p5 }
  0x34   :  { %1591 = shalt.err (!%p1588_p9)
}
  0x35   :  { %25 = dma.hbm_to_vmem [thread:$0]  %s2532_s0, 4096, %s20_s20, [#allocation3], %s1668_s30, %s1668_s30, %s1669_s6  }
  0x36   :  { %s1592_s11 = scalar_lea.hbm %s2534_s2, 16 }
  0x37   :  { %p1593_p10 = scmp.ne.s32.totalorder %s2534_s2, %s1592_s11  ;;  %p1596_p11 = scmp.lt.u32.totalorder %s1592_s11, %s2534_s2 }
  0x39   :  { %p1598_p12 = pnand %p1596_p11, %p1593_p10 }
  0x3b   :  { %1601 = shalt.err (!%p1598_p12)
}
  0x3c   :  { %s1602_s16 = scalar_lea.vmem %s45_s23, 16  ;;  %s1606_s1 = scalar_lea.vmem %s45_s23, 32 }
  0x3d   :  { %p1603_p13 = scmp.ne.s32.totalorder %s45_s23, %s1602_s16  ;;  %p1607_p0 = scmp.lt.s32.totalorder %s45_s23, %s45_s23 }
  0x3e   :  { %p1608_p1 = scmp.lt.s32.totalorder %s1606_s1, %s1602_s16 }
  0x40   :  { %p1609_p2 = por %p1608_p1, %p1607_p0 }
  0x42   :  { %p1610_p3 = pnand %p1609_p2, %p1603_p13 }
  0x44   :  { %1613 = shalt.err (!%p1610_p3)
}
  0x45   :  { %47 = dma.hbm_to_vmem [thread:$0]  %s2534_s2, 16, %s45_s23, [#allocation6]  }
  0x46   :  { %s1672_s18 = smov [#allocation10]   ;;  %s1614_s24 = scalar_lea.hbm %s2536_s4, 16 }
  0x47   :  { %s64_s19 = sshll.u32 %s1672_s18, 4  ;;  %p1615_p4 = scmp.ne.s32.totalorder %s2536_s4, %s1614_s24  ;;  %s65_s19 = int_to_ptr.vmem [resolvable:$true] %s64_s19 }
  0x48   :  { %p1618_p5 = scmp.lt.u32.totalorder %s1614_s24, %s2536_s4 }
  0x4a   :  { %p1620_p6 = pnand %p1618_p5, %p1615_p4 }
  0x4c   :  { %1623 = shalt.err (!%p1620_p6)
}
  0x4d   :  { %s1624_s29 = scalar_lea.vmem %s65_s19, 16  ;;  %s1628_s2 = scalar_lea.vmem %s65_s19, 32 }
  0x4e   :  { %p1625_p7 = scmp.ne.s32.totalorder %s65_s19, %s1624_s29  ;;  %p1629_p8 = scmp.lt.s32.totalorder %s65_s19, %s65_s19 }
  0x4f   :  { %p1630_p9 = scmp.lt.s32.totalorder %s1628_s2, %s1624_s29 }
  0x51   :  { %p1631_p10 = por %p1630_p9, %p1629_p8 }
  0x53   :  { %p1632_p11 = pnand %p1631_p10, %p1625_p7 }
  0x55   :  { %1635 = shalt.err (!%p1632_p11)
}
  0x56   :  { %67 = dma.hbm_to_vmem [thread:$0]  %s2536_s4, 16, %s65_s19, [#allocation9]  }
  0x57   :  { %1658 = dma.done.wait [#allocation3], 4096  }
  0x58   :  { %1659 = vsyncadd [#allocation3], 4294963200 }
  0x59   :  { %1660 = dma.done.wait [#allocation6], 528  }
  0x5a   :  { %1661 = vsyncadd [#allocation6], 4294966768 }
  0x5b   :  { %1662 = dma.done.wait [#allocation9], 32  }
  0x5c   :  { %1663 = vsyncadd [#allocation9], 4294967264  ;;  %vm126_vm0 = vcmask 261120   ;;  %v115_v0 = vld [vmem:[#allocation5] sm:$0xff]  ;;  %v116_v1 = vld [vmem:[#allocation5 + $0x8] sm:$0xff]  ;;  %vm608_vm1 = vcmask 523264  }
  0x5d   :  { %v117_v2 = vld [vmem:[#allocation5 + $0x10] sm:$0xff]  ;;  %v1378_v3 = vpack.c.bf16 %v116_v1, %v115_v0  ;;  %v118_v4 = vld [vmem:[#allocation5 + $0x18] sm:$0xff]  ;;  %v83_v5 = vld [vmem:[#allocation2] sm:$0xff]  ;;  %s1673_s4 = smov [#allocation11]  }
  0x5e   :  { %v99_v6 = vld [vmem:[#allocation2 + $0x80] sm:$0xff]  ;;  %v1382_v7 = vpack.c.bf16 %v118_v4, %v117_v2  ;;  %1330 = vmatprep.mubr.msk.f32.mxu0 %vm126_vm0, %v83_v5  ;;  %v84_v8 = vld [vmem:[#allocation2 + $0x8] sm:$0xff]  ;;  %v85_v10 = vld [vmem:[#allocation2 + $0x10] sm:$0xff]  ;;  %s1237_s3 = sshll.u32 %s1673_s4, 4  ;;  %s1238_s3 = int_to_ptr.vmem [resolvable:$true] %s1237_s3 }
  0x5f   :  { %1354 = vmatprep.mubr.msk.f32.mxu1 %vm126_vm0, %v99_v6  ;;  %1379 = vmatprep.subr.bf16.mxu0 %v1378_v3  ;;  %v100_v9 = vld [vmem:[#allocation2 + $0x88] sm:$0xff]  ;;  %v101_v11 = vld [vmem:[#allocation2 + $0x90] sm:$0xff]  ;;  %v86_v12 = vld [vmem:[#allocation2 + $0x18] sm:$0xff]  ;;  %s1636_s21 = scalar_lea.vmem %s1238_s3, 4096  ;;  %p1641_p13 = scmp.lt.s32.totalorder %s1238_s3, %s1238_s3 }
  0x60   :  { %1386 = vmatprep.subr.bf16.mxu1 %v1378_v3  ;;  %1381 = vmatpush3.bf16.msra.mxu0 %v1378_v3  ;;  %v102_v13 = vld [vmem:[#allocation2 + $0x98] sm:$0xff]  ;;  %v87_v14 = vld [vmem:[#allocation2 + $0x20] sm:$0xff]  ;;  %v88_v16 = vld [vmem:[#allocation2 + $0x28] sm:$0xff]  ;;  %p1637_p12 = scmp.ne.s32.totalorder %s1238_s3, %s1636_s21  ;;  %p1642_p0 = scmp.lt.s32.totalorder %s1636_s21, %s1636_s21 }
  0x61   :  { %1388 = vmatpush3.bf16.msra.mxu1 %v1378_v3  ;;  %1383 = vmatprep.subr.bf16.mxu0 %v1382_v7  ;;  %v103_v15 = vld [vmem:[#allocation2 + $0xa0] sm:$0xff]  ;;  %v104_v17 = vld [vmem:[#allocation2 + $0xa8] sm:$0xff]  ;;  %v89_v18 = vld [vmem:[#allocation2 + $0x30] sm:$0xff] }
  0x62   :  { %1387 = vmatprep.subr.bf16.mxu1 %v1382_v7  ;;  %v105_v19 = vld [vmem:[#allocation2 + $0xb0] sm:$0xff]  ;;  %v90_v20 = vld [vmem:[#allocation2 + $0x38] sm:$0xff]  ;;  %v91_v22 = vld [vmem:[#allocation2 + $0x40] sm:$0xff]  ;;  %p1643_p1 = por %p1642_p0, %p1641_p13 }
  0x63   :  { %v106_v21 = vld [vmem:[#allocation2 + $0xb8] sm:$0xff]  ;;  %v107_v23 = vld [vmem:[#allocation2 + $0xc0] sm:$0xff]  ;;  %v92_v24 = vld [vmem:[#allocation2 + $0x48] sm:$0xff] }
  0x64   :  { %1385 = vmatpush3.bf16.msra.mxu0 %v1382_v7  ;;  %v108_v25 = vld [vmem:[#allocation2 + $0xc8] sm:$0xff]  ;;  %v93_v26 = vld [vmem:[#allocation2 + $0x50] sm:$0xff]  ;;  %v94_v28 = vld [vmem:[#allocation2 + $0x58] sm:$0xff]  ;;  %p1644_p2 = pnand %p1643_p1, %p1637_p12 }
  0x65   :  { %1389 = vmatpush3.bf16.msra.mxu1 %v1382_v7  ;;  %v109_v27 = vld [vmem:[#allocation2 + $0xd0] sm:$0xff]  ;;  %v110_v29 = vld [vmem:[#allocation2 + $0xd8] sm:$0xff]  ;;  %v95_v30 = vld [vmem:[#allocation2 + $0x60] sm:$0xff] }
  0x66   :  { %v111_v31 = vld [vmem:[#allocation2 + $0xe0] sm:$0xff]  ;;  %v96_v32 = vld [vmem:[#allocation2 + $0x68] sm:$0xff]  ;;  %v97_v34 = vld [vmem:[#allocation2 + $0x70] sm:$0xff] }
  0x67   :  { %1331 = vmatmul.mubr.msk.f32.vlgmr.msra.gmra.mrb[0].mxu0 %vm126_vm0, %v84_v8  ;;  %v112_v33 = vld [vmem:[#allocation2 + $0xe8] sm:$0xff]  ;;  %v113_v35 = vld [vmem:[#allocation2 + $0xf0] sm:$0xff]  ;;  %v98_v36 = vld [vmem:[#allocation2 + $0x78] sm:$0xff] }
  0x68   :  { %1355 = vmatmul.mubr.msk.f32.vlgmr.msra.gmra.mrb[0].mxu1 %vm126_vm0, %v100_v9  ;;  %1333 = vmatprep.mubr.msk.f32.mxu0 %vm126_vm0, %v85_v10  ;;  %v114_v37 = vld [vmem:[#allocation2 + $0xf8] sm:$0xff]  ;;  %v1810_v38 = vld [vmem:[#allocation7] ss:$0 sm:$0xff] }
  0x69   :  { %1357 = vmatprep.mubr.msk.f32.mxu1 %vm126_vm0, %v101_v11 }
  0x6b   :  { %1334 = vmatmul.mubr.msk.f32.gmra.mrb[2].mxu0 %vm126_vm0, %v86_v12 }
  0x6c   :  { %1358 = vmatmul.mubr.msk.f32.gmra.mrb[2].mxu1 %vm126_vm0, %v102_v13  ;;  %1336 = vmatprep.mubr.msk.f32.mxu0 %vm126_vm0, %v87_v14 }
  0x6d   :  { %1360 = vmatprep.mubr.msk.f32.mxu1 %vm126_vm0, %v103_v15 }
  0x6f   :  { %1337 = vmatmul.mubr.msk.f32.gmra.mrb[4].mxu0 %vm126_vm0, %v88_v16 }
  0x70   :  { %1361 = vmatmul.mubr.msk.f32.gmra.mrb[4].mxu1 %vm126_vm0, %v104_v17  ;;  %1339 = vmatprep.mubr.msk.f32.mxu0 %vm126_vm0, %v89_v18 }
  0x71   :  { %1363 = vmatprep.mubr.msk.f32.mxu1 %vm126_vm0, %v105_v19 }
  0x73   :  { %1340 = vmatmul.mubr.msk.f32.gmra.mrb[6].mxu0 %vm126_vm0, %v90_v20 }
  0x74   :  { %1364 = vmatmul.mubr.msk.f32.gmra.mrb[6].mxu1 %vm126_vm0, %v106_v21  ;;  %1342 = vmatprep.mubr.msk.f32.mxu0 %vm126_vm0, %v91_v22 }
  0x75   :  { %1366 = vmatprep.mubr.msk.f32.mxu1 %vm126_vm0, %v107_v23 }
  0x77   :  { %1343 = vmatmul.mubr.msk.f32.gmra.mrb[8].mxu0 %vm126_vm0, %v92_v24 }
  0x78   :  { %1367 = vmatmul.mubr.msk.f32.gmra.mrb[8].mxu1 %vm126_vm0, %v108_v25  ;;  %1345 = vmatprep.mubr.msk.f32.mxu0 %vm126_vm0, %v93_v26 }
  0x79   :  { %1369 = vmatprep.mubr.msk.f32.mxu1 %vm126_vm0, %v109_v27 }
  0x7b   :  { %1346 = vmatmul.mubr.msk.f32.gmra.mrb[10].mxu0 %vm126_vm0, %v94_v28 }
  0x7c   :  { %1370 = vmatmul.mubr.msk.f32.gmra.mrb[10].mxu1 %vm126_vm0, %v110_v29  ;;  %1348 = vmatprep.mubr.msk.f32.mxu0 %vm126_vm0, %v95_v30 }
  0x7d   :  { %1372 = vmatprep.mubr.msk.f32.mxu1 %vm126_vm0, %v111_v31 }
  0x7f   :  { %1349 = vmatmul.mubr.msk.f32.gmra.mrb[12].mxu0 %vm126_vm0, %v96_v32 }
  0x80   :  { %1373 = vmatmul.mubr.msk.f32.gmra.mrb[12].mxu1 %vm126_vm0, %v112_v33  ;;  %1351 = vmatprep.mubr.msk.f32.mxu0 %vm126_vm0, %v97_v34 }
  0x81   :  { %1375 = vmatprep.mubr.msk.f32.mxu1 %vm126_vm0, %v113_v35 }
  0x83   :  { %1352 = vmatmul.mubr.msk.f32.gmra.mrb[14].mxu0 %vm126_vm0, %v98_v36 }
  0x84   :  { %1376 = vmatmul.mubr.msk.f32.gmra.mrb[14].mxu1 %vm126_vm0, %v114_v37 }
 0x13a   :  { %v1332_v39 = vpop.f32.mrb[0].mxu0 }
 0x13b   :  { %v1356_v40 = vpop.f32.mrb[0].mxu1  ;;  %v295_v41 = vadd.f32 %v1332_v39, %v1810_v38  ;;  %v289_v43 = vpop.f32.mrb[1].mxu0 }
 0x13c   :  { %v375_v42 = vadd.f32 %v1356_v40, %v1810_v38  ;;  %v369_v44 = vpop.f32.mrb[1].mxu1  ;;  %v290_v45 = vadd.f32 %v1810_v38, %v289_v43 }
 0x13d   :  { %v370_v46 = vadd.f32 %v1810_v38, %v369_v44  ;;  %v481_v47 = vmul.f32 0.70710677, %v295_v41  ;;  %v449_v9 = vmul.f32 0.5, %v295_v41 }
 0x13e   :  { %v497_v48 = vmul.f32 0.70710677, %v375_v42  ;;  %v480_v49 = vmul.f32 0.70710677, %v290_v45  ;;  %v1335_v51 = vpop.f32.mrb[2].mxu0  ;;  %v465_v14 = vmul.f32 0.5, %v375_v42 }
 0x13f   :  { %v496_v50 = vmul.f32 0.70710677, %v370_v46  ;;  %1398 = verf.f32 %v481_v47  ;;  %v1359_v52 = vpop.f32.mrb[2].mxu1  ;;  %v1817_v53 = vadd.f32 %v1335_v51, %v1810_v38  ;;  %v299_v54 = vpop.f32.mrb[3].mxu0  ;;  %v448_v19 = vmul.f32 0.5, %v290_v45 }
 0x140   :  { %1400 = verf.f32 %v497_v48  ;;  %v379_v55 = vpop.f32.mrb[3].mxu1  ;;  %v1821_v57 = vadd.f32 %v1359_v52, %v1810_v38  ;;  %v1826_v60 = vadd.f32 %v1810_v38, %v299_v54  ;;  %v464_v33 = vmul.f32 0.5, %v370_v46 }
 0x141   :  { %1402 = verf.f32 %v480_v49  ;;  %v483_v56 = vmul.f32 0.70710677, %v1817_v53  ;;  %v1829_v63 = vadd.f32 %v1810_v38, %v379_v55  ;;  %v451_v48 = vmul.f32 0.5, %v1817_v53 }
 0x142   :  { %1404 = verf.f32 %v496_v50  ;;  %v1338_v58 = vpop.f32.mrb[4].mxu0  ;;  %v499_v0 = vmul.f32 0.70710677, %v1821_v57  ;;  %v482_v4 = vmul.f32 0.70710677, %v1826_v60 }
 0x143   :  { %v1823_v59 = vpop.f32.mrb[4].mxu1  ;;  %v309_v61 = vpop.f32.mrb[5].mxu0  ;;  %1406 = verf.f32 %v483_v56  ;;  %v498_v7 = vmul.f32 0.70710677, %v1829_v63  ;;  %v1869_v34 = vadd.f32 %v1338_v58, %v1810_v38 }
 0x144   :  { %v389_v62 = vpop.f32.mrb[5].mxu1  ;;  %1408 = verf.f32 %v499_v0  ;;  %v1872_v35 = vadd.f32 %v1810_v38, %v309_v61  ;;  %v1894_v50 = vadd.f32 %v1823_v59, %v1810_v38  ;;  %v467_v59 = vmul.f32 0.5, %v1821_v57 }
 0x145   :  { %1410 = verf.f32 %v482_v4  ;;  %v485_v47 = vmul.f32 0.70710677, %v1869_v34  ;;  %v1897_v51 = vadd.f32 %v1810_v38, %v389_v62 }
 0x146   :  { %v1832_v1 = vpop.f32.mrb[6].mxu0  ;;  %1412 = verf.f32 %v498_v7  ;;  %v484_v49 = vmul.f32 0.70710677, %v1872_v35 }
 0x147   :  { %v1834_v2 = vpop.f32.mrb[6].mxu1  ;;  %v1836_v3 = vpop.f32.mrb[7].mxu0  ;;  %1414 = verf.f32 %v485_v47 }
 0x148   :  { %v1839_v5 = vpop.f32.mrb[7].mxu1  ;;  %1416 = verf.f32 %v484_v49 }
 0x149   :  { %v1399_v6 = vpop.eup %1398 }
 0x14a   :  { %v1401_v8 = vpop.eup %1400  ;;  %v545_v10 = vadd.f32 1.0, %v1399_v6  ;;  %v1344_v11 = vpop.f32.mrb[8].mxu0 }
 0x14b   :  { %v1842_v12 = vpop.f32.mrb[8].mxu1  ;;  %v1403_v13 = vpop.eup %1402  ;;  %v561_v15 = vadd.f32 1.0, %v1401_v8  ;;  %v1916_v7 = vadd.f32 %v1344_v11, %v1810_v38  ;;  %v501_v8 = vmul.f32 0.70710677, %v1894_v50 }
 0x14c   :  { %v1844_v16 = vpop.f32.mrb[9].mxu0  ;;  %v1846_v17 = vpop.f32.mrb[9].mxu1  ;;  %v544_v20 = vadd.f32 1.0, %v1403_v13  ;;  %v1848_v21 = vmul.f32 %v545_v10, %v449_v9  ;;  %v500_v9 = vmul.f32 0.70710677, %v1897_v51 }
 0x14d   :  { %v1405_v18 = vpop.eup %1404  ;;  %v1850_v22 = vmul.f32 %v561_v15, %v465_v14  ;;  %v1929_v11 = vadd.f32 %v1810_v38, %v1844_v16 }
 0x14e   :  { %v1852_v23 = vmul.f32 %v544_v20, %v448_v19  ;;  %v560_v24 = vadd.f32 1.0, %v1405_v18  ;;  %v612_v25 = vsel %vm608_vm1, %v1848_v21, 0.0  ;;  %v1856_v26 = vpop.f32.mrb[10].mxu0  ;;  %v739_v29 = vmul.f32 %v1848_v21, %v1848_v21  ;;  %v1407_v32 = vpop.eup %1406 }
 0x14f   :  { %v1858_v27 = vpop.f32.mrb[10].mxu1  ;;  %v660_v28 = vsel %vm608_vm1, %v1850_v22, 0.0  ;;  %613 = vadd.xlane.f32.xlu0 %v612_v25  ;;  %v1864_v30 = vpop.f32.mrb[11].mxu0  ;;  %v547_v41 = vadd.f32 1.0, %v1407_v32  ;;  %v755_v43 = vmul.f32 %v1850_v22, %v1850_v22  ;;  %v1933_v19 = vadd.f32 %v1842_v12, %v1810_v38 }
 0x150   :  { %v1866_v31 = vpop.f32.mrb[11].mxu1  ;;  %661 = vadd.xlane.f32.xlu1 %v660_v28  ;;  %v1874_v36 = vmul.f32 %v560_v24, %v464_v33  ;;  %v609_v37 = vsel %vm608_vm1, %v1852_v23, 0.0  ;;  %v773_v42 = vsel %vm608_vm1, %v739_v29, 0.0  ;;  %v1409_v46 = vpop.eup %1408  ;;  %v738_v55 = vmul.f32 %v1852_v23, %v1852_v23 }
 0x151   :  { %v1411_v52 = vpop.eup %1410  ;;  %v1907_v61 = vmul.f32 %v547_v41, %v451_v48  ;;  %v563_v0 = vadd.f32 1.0, %v1409_v46  ;;  %v821_v62 = vsel %vm608_vm1, %v755_v43, 0.0  ;;  %v450_v20 = vmul.f32 0.5, %v1826_v60 }
 0x152   :  { %v1878_v39 = vpop.f32.mrb[12].mxu0  ;;  %v657_v54 = vsel %vm608_vm1, %v1874_v36, 0.0  ;;  %v1413_v53 = vpop.eup %1412  ;;  %v546_v10 = vadd.f32 1.0, %v1411_v52  ;;  %v770_v13 = vsel %vm608_vm1, %v738_v55, 0.0  ;;  %v754_v14 = vmul.f32 %v1874_v36, %v1874_v36 }
 0x153   :  { %v1880_v40 = vpop.f32.mrb[12].mxu1  ;;  %610 = vadd.xlane.f32.xlu0 %v609_v37  ;;  %v1885_v44 = vpop.f32.mrb[13].mxu0  ;;  %v562_v57 = vadd.f32 1.0, %v1413_v53  ;;  %v1923_v15 = vmul.f32 %v563_v0, %v467_v59  ;;  %v618_v18 = vsel %vm608_vm1, %v1907_v61, 0.0  ;;  %v466_v24 = vmul.f32 0.5, %v1829_v63 }
 0x154   :  { %v1887_v45 = vpop.f32.mrb[13].mxu1  ;;  %774 = vadd.xlane.f32.xlu1 %v773_v42  ;;  %v1939_v25 = vadd.f32 %v1810_v38, %v1846_v17  ;;  %1418 = verf.f32 %v500_v9  ;;  %v1941_v28 = vmul.f32 %v546_v10, %v450_v20  ;;  %v818_v16 = vsel %vm608_vm1, %v754_v14, 0.0  ;;  %v1415_v32 = vpop.eup %1414 }
 0x155   :  { %v1943_v29 = vmul.f32 %v562_v57, %v466_v24  ;;  %1420 = verf.f32 %v501_v8  ;;  %v666_v12 = vsel %vm608_vm1, %v1923_v15, 0.0  ;;  %v1950_v60 = vadd.f32 %v1810_v38, %v1836_v3  ;;  %v1417_v41 = vpop.eup %1416 }
 0x156   :  { %v1903_v56 = vpop.f32.mrb[14].mxu0  ;;  %v1954_v63 = vadd.f32 %v1856_v26, %v1810_v38  ;;  %v1958_v17 = vadd.f32 %v1832_v1, %v1810_v38  ;;  %v740_v37 = vmul.f32 %v1941_v28, %v1941_v28  ;;  %v615_v3 = vsel %vm608_vm1, %v1941_v28, 0.0 }
 0x157   :  { %v1905_v58 = vpop.f32.mrb[14].mxu1  ;;  %658 = vadd.xlane.f32.xlu0 %v657_v54  ;;  %v1911_v4 = vpop.f32.mrb[15].mxu0  ;;  %v663_v33 = vsel %vm608_vm1, %v1943_v29, 0.0  ;;  %v741_v26 = vmul.f32 %v1907_v61, %v1907_v61  ;;  %v1970_v42 = vadd.f32 %v1810_v38, %v1864_v30  ;;  %v1974_v1 = vadd.f32 %v1858_v27, %v1810_v38 }
 0x158   :  { %v1913_v6 = vpop.f32.mrb[15].mxu1  ;;  %822 = vadd.xlane.f32.xlu1 %v821_v62  ;;  %v453_v43 = vmul.f32 0.5, %v1869_v34  ;;  %v486_v46 = vmul.f32 0.70710677, %v1950_v60  ;;  %v1980_v47 = vadd.f32 %v1810_v38, %v1866_v31  ;;  %v452_v48 = vmul.f32 0.5, %v1872_v35 }
 0x159   :  { %v487_v49 = vmul.f32 0.70710677, %v1958_v17  ;;  %v1986_v30 = vadd.f32 %v1834_v2, %v1810_v38  ;;  %v1990_v27 = vadd.f32 %v1810_v38, %v1839_v5  ;;  %v549_v34 = vadd.f32 1.0, %v1415_v32 }
 0x15a   :  { %v548_v52 = vadd.f32 1.0, %v1417_v41  ;;  %v776_v54 = vsel %vm608_vm1, %v740_v37, 0.0  ;;  %v756_v31 = vmul.f32 %v1943_v29, %v1943_v29  ;;  %v779_v35 = vsel %vm608_vm1, %v741_v26, 0.0 }
 0x15b   :  { %771 = vadd.xlane.f32.xlu0 %v770_v13  ;;  %v757_v53 = vmul.f32 %v1923_v15, %v1923_v15  ;;  %v2000_v2 = vadd.f32 %v1878_v39, %v1810_v38  ;;  %v469_v59 = vmul.f32 0.5, %v1894_v50  ;;  %1422 = verf.f32 %v486_v46 }
 0x15c   :  { %619 = vadd.xlane.f32.xlu1 %v618_v18  ;;  %v468_v0 = vmul.f32 0.5, %v1897_v51  ;;  %1424 = verf.f32 %v487_v49  ;;  %v503_v62 = vmul.f32 0.70710677, %v1986_v30  ;;  %v502_v8 = vmul.f32 0.70710677, %v1990_v27 }
 0x15d   :  { %v2006_v9 = vmul.f32 %v549_v34, %v453_v43  ;;  %v2008_v10 = vmul.f32 %v548_v52, %v452_v48  ;;  %v824_v39 = vsel %vm608_vm1, %v756_v31, 0.0  ;;  %v827_v14 = vsel %vm608_vm1, %v757_v53, 0.0 }
 0x15e   :  { %v1419_v55 = vpop.eup %1418  ;;  %v2014_v50 = vadd.f32 %v1810_v38, %v1885_v44  ;;  %v2018_v51 = vadd.f32 %v1880_v40, %v1810_v38  ;;  %v2022_v18 = vadd.f32 %v1810_v38, %v1887_v45  ;;  %1426 = verf.f32 %v502_v8 }
 0x15f   :  { %819 = vadd.xlane.f32.xlu0 %v818_v16  ;;  %v1421_v5 = vpop.eup %1420  ;;  %v564_v57 = vadd.f32 1.0, %v1419_v55  ;;  %1428 = verf.f32 %v503_v62  ;;  %v621_v24 = vsel %vm608_vm1, %v2008_v10, 0.0  ;;  %v624_v44 = vsel %vm608_vm1, %v2006_v9, 0.0 }
 0x160   :  { %667 = vadd.xlane.f32.xlu1 %v666_v12  ;;  %v565_v13 = vadd.f32 1.0, %v1421_v5  ;;  %v2034_v40 = vadd.f32 %v1903_v56, %v1810_v38  ;;  %v742_v32 = vmul.f32 %v2008_v10, %v2008_v10  ;;  %v743_v41 = vmul.f32 %v2006_v9, %v2006_v9 }
 0x161   :  { %v2024_v20 = vmul.f32 %v564_v57, %v468_v0  ;;  %v2046_v56 = vadd.f32 %v1810_v38, %v1911_v4  ;;  %v488_v43 = vmul.f32 0.70710677, %v1929_v11  ;;  %v2052_v46 = vadd.f32 %v1905_v58, %v1810_v38 }
 0x162   :  { %v2028_v16 = vmul.f32 %v565_v13, %v469_v59  ;;  %v455_v48 = vmul.f32 0.5, %v1958_v17  ;;  %v489_v49 = vmul.f32 0.70710677, %v1916_v7  ;;  %v782_v34 = vsel %vm608_vm1, %v742_v32, 0.0 }
 0x163   :  { %664 = vadd.xlane.f32.xlu0 %v663_v33  ;;  %v669_v12 = vsel %vm608_vm1, %v2024_v20, 0.0  ;;  %v758_v52 = vmul.f32 %v2024_v20, %v2024_v20  ;;  %v2064_v58 = vadd.f32 %v1810_v38, %v1913_v6  ;;  %1430 = verf.f32 %v488_v43 }
 0x164   :  { %616 = vadd.xlane.f32.xlu1 %v615_v3  ;;  %v672_v37 = vsel %vm608_vm1, %v2028_v16, 0.0  ;;  %v454_v3 = vmul.f32 0.5, %v1950_v60  ;;  %v785_v60 = vsel %vm608_vm1, %v743_v41, 0.0  ;;  %v759_v31 = vmul.f32 %v2028_v16, %v2028_v16 }
 0x165   :  { %v1423_v45 = vpop.eup %1422  ;;  %v504_v53 = vmul.f32 0.70710677, %v1939_v25  ;;  %1432 = verf.f32 %v489_v49  ;;  %v505_v59 = vmul.f32 0.70710677, %v1933_v19  ;;  %v830_v0 = vsel %vm608_vm1, %v758_v52, 0.0 }
 0x166   :  { %v1425_v33 = vpop.eup %1424  ;;  %v550_v26 = vadd.f32 1.0, %v1423_v45  ;;  %v471_v38 = vmul.f32 0.5, %v1986_v30  ;;  %v833_v8 = vsel %vm608_vm1, %v759_v31, 0.0  ;;  %v491_v32 = vmul.f32 0.70710677, %v1954_v63 }
 0x167   :  { %777 = vadd.xlane.f32.xlu0 %v776_v54  ;;  %v551_v54 = vadd.f32 1.0, %v1425_v33  ;;  %1434 = verf.f32 %v504_v53  ;;  %v490_v33 = vmul.f32 0.70710677, %v1970_v42  ;;  %v473_v53 = vmul.f32 0.5, %v1933_v19 }
 0x168   :  { %780 = vadd.xlane.f32.xlu1 %v779_v35  ;;  %v1427_v4 = vpop.eup %1426  ;;  %v2066_v55 = vmul.f32 %v550_v26, %v454_v3  ;;  %v470_v35 = vmul.f32 0.5, %v1990_v27  ;;  %1436 = verf.f32 %v505_v59 }
 0x169   :  { %v1429_v17 = vpop.eup %1428  ;;  %v566_v5 = vadd.f32 1.0, %v1427_v4  ;;  %v2072_v62 = vmul.f32 %v551_v54, %v455_v48  ;;  %v457_v48 = vmul.f32 0.5, %v1916_v7  ;;  %1438 = verf.f32 %v491_v32 }
 0x16a   :  { %v567_v6 = vadd.f32 1.0, %v1429_v17  ;;  %v627_v57 = vsel %vm608_vm1, %v2066_v55, 0.0  ;;  %1440 = verf.f32 %v490_v33  ;;  %v506_v54 = vmul.f32 0.70710677, %v1980_v47 }
 0x16b   :  { %825 = vadd.xlane.f32.xlu0 %v824_v39  ;;  %v2076_v27 = vmul.f32 %v566_v5, %v470_v35  ;;  %v630_v13 = vsel %vm608_vm1, %v2072_v62, 0.0  ;;  %v745_v45 = vmul.f32 %v2072_v62, %v2072_v62  ;;  %v507_v7 = vmul.f32 0.70710677, %v1974_v1 }
 0x16c   :  { %828 = vadd.xlane.f32.xlu1 %v827_v14  ;;  %v2080_v39 = vmul.f32 %v567_v6, %v471_v38  ;;  %v744_v14 = vmul.f32 %v2066_v55, %v2066_v55  ;;  %1442 = verf.f32 %v506_v54  ;;  %v475_v54 = vmul.f32 0.5, %v1974_v1 }
 0x16d   :  { %v675_v30 = vsel %vm608_vm1, %v2076_v27, 0.0  ;;  %v760_v26 = vmul.f32 %v2076_v27, %v2076_v27  ;;  %1444 = verf.f32 %v507_v7 }
 0x16e   :  { %v788_v3 = vsel %vm608_vm1, %v744_v14, 0.0  ;;  %v761_v52 = vmul.f32 %v2080_v39, %v2080_v39 }
 0x16f   :  { %622 = vadd.xlane.f32.xlu0 %v621_v24  ;;  %v1431_v24 = vpop.eup %1430  ;;  %v836_v17 = vsel %vm608_vm1, %v760_v26, 0.0 }
 0x170   :  { %625 = vadd.xlane.f32.xlu1 %v624_v44  ;;  %v678_v44 = vsel %vm608_vm1, %v2080_v39, 0.0  ;;  %v552_v41 = vadd.f32 1.0, %v1431_v24  ;;  %v839_v59 = vsel %vm608_vm1, %v761_v52, 0.0  ;;  %v493_v24 = vmul.f32 0.70710677, %v2000_v2 }
 0x172   :  { %1446 = verf.f32 %v493_v24 }
 0x173   :  { %670 = vadd.xlane.f32.xlu0 %v669_v12  ;;  %v1433_v12 = vpop.eup %1432 }
 0x174   :  { %673 = vadd.xlane.f32.xlu1 %v672_v37  ;;  %v456_v37 = vmul.f32 0.5, %v1929_v11  ;;  %v1435_v43 = vpop.eup %1434  ;;  %v553_v49 = vadd.f32 1.0, %v1433_v12  ;;  %v472_v11 = vmul.f32 0.5, %v1939_v25 }
 0x175   :  { %v1437_v4 = vpop.eup %1436  ;;  %v568_v31 = vadd.f32 1.0, %v1435_v43 }
 0x176   :  { %v2108_v35 = vmul.f32 %v553_v49, %v457_v48  ;;  %v569_v5 = vadd.f32 1.0, %v1437_v4  ;;  %v1439_v19 = vpop.eup %1438  ;;  %v508_v49 = vmul.f32 0.70710677, %v2022_v18 }
 0x177   :  { %783 = vadd.xlane.f32.xlu0 %v782_v34  ;;  %v791_v34 = vsel %vm608_vm1, %v745_v45, 0.0  ;;  %v2112_v25 = vmul.f32 %v568_v31, %v472_v11  ;;  %v458_v45 = vmul.f32 0.5, %v1970_v42  ;;  %v474_v42 = vmul.f32 0.5, %v1980_v47 }
 0x178   :  { %786 = vadd.xlane.f32.xlu1 %v785_v60  ;;  %v2104_v60 = vmul.f32 %v552_v41, %v456_v37  ;;  %v2116_v38 = vmul.f32 %v569_v5, %v473_v53  ;;  %v636_v6 = vsel %vm608_vm1, %v2108_v35, 0.0  ;;  %v747_v14 = vmul.f32 %v2108_v35, %v2108_v35 }
 0x179   :  { %v762_v33 = vmul.f32 %v2112_v25, %v2112_v25  ;;  %v459_v41 = vmul.f32 0.5, %v1954_v63  ;;  %v509_v63 = vmul.f32 0.70710677, %v2018_v51 }
 0x17a   :  { %v797_v26 = vsel %vm608_vm1, %v747_v14, 0.0  ;;  %v763_v43 = vmul.f32 %v2116_v38, %v2116_v38 }
 0x17b   :  { %831 = vadd.xlane.f32.xlu0 %v830_v0  ;;  %v633_v0 = vsel %vm608_vm1, %v2104_v60, 0.0  ;;  %v842_v4 = vsel %vm608_vm1, %v762_v33, 0.0 }
 0x17c   :  { %834 = vadd.xlane.f32.xlu1 %v833_v8  ;;  %v681_v8 = vsel %vm608_vm1, %v2112_v25, 0.0  ;;  %v845_v7 = vsel %vm608_vm1, %v763_v43, 0.0 }
 0x17f   :  { %628 = vadd.xlane.f32.xlu0 %v627_v57  ;;  %v746_v57 = vmul.f32 %v2104_v60, %v2104_v60 }
 0x180   :  { %631 = vadd.xlane.f32.xlu1 %v630_v13  ;;  %v1441_v13 = vpop.eup %1440 }
 0x181   :  { %v554_v12 = vadd.f32 1.0, %v1441_v13  ;;  %v794_v32 = vsel %vm608_vm1, %v746_v57, 0.0  ;;  %v1443_v37 = vpop.eup %1442  ;;  %v495_v57 = vmul.f32 0.70710677, %v2034_v40  ;;  %v494_v13 = vmul.f32 0.70710677, %v2046_v56 }
 0x182   :  { %v1445_v48 = vpop.eup %1444  ;;  %v570_v52 = vadd.f32 1.0, %v1443_v37 }
 0x183   :  { %676 = vadd.xlane.f32.xlu0 %v675_v30  ;;  %v684_v30 = vsel %vm608_vm1, %v2116_v38, 0.0  ;;  %v571_v31 = vadd.f32 1.0, %v1445_v48  ;;  %v1447_v1 = vpop.eup %1446 }
 0x184   :  { %679 = vadd.xlane.f32.xlu1 %v678_v44  ;;  %v492_v44 = vmul.f32 0.70710677, %v2014_v50  ;;  %v2148_v47 = vmul.f32 %v570_v52, %v474_v42 }
 0x185   :  { %v2152_v53 = vmul.f32 %v571_v31, %v475_v54 }
 0x186   :  { %1448 = verf.f32 %v492_v44  ;;  %v764_v44 = vmul.f32 %v2148_v47, %v2148_v47 }
 0x187   :  { %789 = vadd.xlane.f32.xlu0 %v788_v3  ;;  %v555_v3 = vadd.f32 1.0, %v1439_v19  ;;  %1450 = verf.f32 %v508_v49  ;;  %v690_v19 = vsel %vm608_vm1, %v2152_v53, 0.0  ;;  %v765_v37 = vmul.f32 %v2152_v53, %v2152_v53 }
 0x188   :  { %792 = vadd.xlane.f32.xlu1 %v791_v34  ;;  %v2140_v34 = vmul.f32 %v554_v12, %v458_v45  ;;  %1452 = verf.f32 %v509_v63  ;;  %v461_v12 = vmul.f32 0.5, %v2000_v2  ;;  %v511_v2 = vmul.f32 0.70710677, %v2052_v46 }
 0x189   :  { %v2144_v11 = vmul.f32 %v555_v3, %v459_v41  ;;  %1454 = verf.f32 %v495_v57  ;;  %v510_v3 = vmul.f32 0.70710677, %v2064_v58  ;;  %v848_v48 = vsel %vm608_vm1, %v764_v44, 0.0 }
 0x18a   :  { %1456 = verf.f32 %v494_v13  ;;  %v477_v49 = vmul.f32 0.5, %v2018_v51  ;;  %v851_v63 = vsel %vm608_vm1, %v765_v37, 0.0  ;;  %v463_v13 = vmul.f32 0.5, %v2034_v40 }
 0x18b   :  { %837 = vadd.xlane.f32.xlu0 %v836_v17  ;;  %v639_v17 = vsel %vm608_vm1, %v2140_v34, 0.0  ;;  %v642_v5 = vsel %vm608_vm1, %v2144_v11, 0.0  ;;  %1458 = verf.f32 %v510_v3  ;;  %v479_v40 = vmul.f32 0.5, %v2052_v46 }
 0x18c   :  { %840 = vadd.xlane.f32.xlu1 %v839_v59  ;;  %v687_v59 = vsel %vm608_vm1, %v2148_v47, 0.0  ;;  %1460 = verf.f32 %v511_v2 }
 0x18f   :  { %634 = vadd.xlane.f32.xlu0 %v633_v0  ;;  %v748_v0 = vmul.f32 %v2140_v34, %v2140_v34 }
 0x190   :  { %637 = vadd.xlane.f32.xlu1 %v636_v6  ;;  %v1449_v6 = vpop.eup %1448 }
 0x191   :  { %v556_v14 = vadd.f32 1.0, %v1449_v6  ;;  %v800_v24 = vsel %vm608_vm1, %v748_v0, 0.0  ;;  %v1451_v45 = vpop.eup %1450  ;;  %v462_v0 = vmul.f32 0.5, %v2046_v56  ;;  %v478_v56 = vmul.f32 0.5, %v2064_v58 }
 0x192   :  { %v1453_v41 = vpop.eup %1452  ;;  %v572_v43 = vadd.f32 1.0, %v1451_v45 }
 0x193   :  { %682 = vadd.xlane.f32.xlu0 %v681_v8  ;;  %v749_v8 = vmul.f32 %v2144_v11, %v2144_v11  ;;  %v573_v52 = vadd.f32 1.0, %v1453_v41  ;;  %v1455_v51 = vpop.eup %1454 }
 0x194   :  { %685 = vadd.xlane.f32.xlu1 %v684_v30  ;;  %v460_v30 = vmul.f32 0.5, %v2014_v50  ;;  %v476_v50 = vmul.f32 0.5, %v2022_v18 }
 0x195   :  { %v803_v33 = vsel %vm608_vm1, %v749_v8, 0.0  ;;  %v2188_v54 = vmul.f32 %v573_v52, %v477_v49 }
 0x196   :  { %v2184_v18 = vmul.f32 %v572_v43, %v476_v50 }
 0x197   :  { %795 = vadd.xlane.f32.xlu0 %v794_v32  ;;  %v557_v32 = vadd.f32 1.0, %v1447_v1  ;;  %v696_v1 = vsel %vm608_vm1, %v2188_v54, 0.0 }
 0x198   :  { %798 = vadd.xlane.f32.xlu1 %v797_v26  ;;  %v2176_v26 = vmul.f32 %v556_v14, %v460_v30  ;;  %v766_v8 = vmul.f32 %v2184_v18, %v2184_v18  ;;  %v559_v30 = vadd.f32 1.0, %v1455_v51 }
 0x199   :  { %v2180_v42 = vmul.f32 %v557_v32, %v461_v12 }
 0x19a   :  { %v854_v32 = vsel %vm608_vm1, %v766_v8, 0.0 }
 0x19b   :  { %843 = vadd.xlane.f32.xlu0 %v842_v4  ;;  %v645_v4 = vsel %vm608_vm1, %v2176_v26, 0.0  ;;  %v648_v31 = vsel %vm608_vm1, %v2180_v42, 0.0 }
 0x19c   :  { %846 = vadd.xlane.f32.xlu1 %v845_v7  ;;  %v693_v7 = vsel %vm608_vm1, %v2184_v18, 0.0 }
 0x19f   :  { %640 = vadd.xlane.f32.xlu0 %v639_v17  ;;  %v750_v17 = vmul.f32 %v2176_v26, %v2176_v26 }
 0x1a0   :  { %643 = vadd.xlane.f32.xlu1 %v642_v5  ;;  %v1457_v5 = vpop.eup %1456 }
 0x1a1   :  { %v558_v6 = vadd.f32 1.0, %v1457_v5  ;;  %v1459_v57 = vpop.eup %1458 }
 0x1a2   :  { %v1461_v44 = vpop.eup %1460  ;;  %v574_v12 = vadd.f32 1.0, %v1459_v57 }
 0x1a3   :  { %688 = vadd.xlane.f32.xlu0 %v687_v59  ;;  %v751_v59 = vmul.f32 %v2180_v42, %v2180_v42  ;;  %v2208_v45 = vmul.f32 %v558_v6, %v462_v0  ;;  %v575_v37 = vadd.f32 1.0, %v1461_v44 }
 0x1a4   :  { %691 = vadd.xlane.f32.xlu1 %v690_v19  ;;  %v806_v19 = vsel %vm608_vm1, %v750_v17, 0.0  ;;  %v2216_v50 = vmul.f32 %v574_v12, %v478_v56 }
 0x1a5   :  { %v809_v14 = vsel %vm608_vm1, %v751_v59, 0.0  ;;  %v651_v3 = vsel %vm608_vm1, %v2208_v45, 0.0  ;;  %v2220_v43 = vmul.f32 %v575_v37, %v479_v40  ;;  %v752_v2 = vmul.f32 %v2208_v45, %v2208_v45 }
 0x1a6   :  { %v699_v46 = vsel %vm608_vm1, %v2216_v50, 0.0 }
 0x1a7   :  { %801 = vadd.xlane.f32.xlu0 %v800_v24  ;;  %v767_v24 = vmul.f32 %v2188_v54, %v2188_v54  ;;  %v812_v52 = vsel %vm608_vm1, %v752_v2, 0.0 }
 0x1a8   :  { %804 = vadd.xlane.f32.xlu1 %v803_v33  ;;  %v2212_v33 = vmul.f32 %v559_v30, %v463_v13 }
 0x1a9   :  { %v857_v41 = vsel %vm608_vm1, %v767_v24, 0.0 }
 0x1aa   :  { %v654_v58 = vsel %vm608_vm1, %v2212_v33, 0.0  ;;  %v753_v49 = vmul.f32 %v2212_v33, %v2212_v33 }
 0x1ab   :  { %849 = vadd.xlane.f32.xlu0 %v848_v48  ;;  %v702_v48 = vsel %vm608_vm1, %v2220_v43, 0.0 }
 0x1ac   :  { %852 = vadd.xlane.f32.xlu1 %v851_v63  ;;  %v768_v63 = vmul.f32 %v2216_v50, %v2216_v50 }
 0x1ae   :  { %v860_v51 = vsel %vm608_vm1, %v768_v63, 0.0 }
 0x1af   :  { %646 = vadd.xlane.f32.xlu0 %v645_v4  ;;  %v815_v4 = vsel %vm608_vm1, %v753_v49, 0.0 }
 0x1b0   :  { %649 = vadd.xlane.f32.xlu1 %v648_v31  ;;  %v769_v31 = vmul.f32 %v2220_v43, %v2220_v43 }
 0x1b3   :  { %694 = vadd.xlane.f32.xlu0 %v693_v7  ;;  %v863_v7 = vsel %vm608_vm1, %v769_v31, 0.0 }
 0x1b4   :  { %697 = vadd.xlane.f32.xlu1 %v696_v1 }
 0x1b7   :  { %807 = vadd.xlane.f32.xlu0 %v806_v19 }
 0x1b8   :  { %810 = vadd.xlane.f32.xlu1 %v809_v14 }
 0x1bb   :  { %855 = vadd.xlane.f32.xlu0 %v854_v32 }
 0x1bc   :  { %858 = vadd.xlane.f32.xlu1 %v857_v41 }
 0x1bf   :  { %652 = vadd.xlane.f32.xlu0 %v651_v3 }
 0x1c0   :  { %655 = vadd.xlane.f32.xlu1 %v654_v58 }
 0x1c3   :  { %700 = vadd.xlane.f32.xlu0 %v699_v46 }
 0x1c4   :  { %703 = vadd.xlane.f32.xlu1 %v702_v48 }
 0x1c7   :  { %813 = vadd.xlane.f32.xlu0 %v812_v52 }
 0x1c8   :  { %816 = vadd.xlane.f32.xlu1 %v815_v4 }
 0x1cb   :  { %861 = vadd.xlane.f32.xlu0 %v860_v51 }
 0x1cc   :  { %864 = vadd.xlane.f32.xlu1 %v863_v7 }
 0x1dc   :  { %v614_v17 = vpop.xlane.xlu0 %613 }
 0x1dd   :  { %v662_v5 = vpop.xlane.xlu1 %661  ;;  %v707_v1 = vmul.f32 0.015625, %v614_v17 }
 0x1de   :  { %v723_v6 = vmul.f32 0.015625, %v662_v5 }
 0x1df   :  { %v899_v19 = vmul.f32 %v707_v1, %v707_v1 }
 0x1e0   :  { %v611_v59 = vpop.xlane.xlu0 %610  ;;  %v915_v24 = vmul.f32 %v723_v6, %v723_v6 }
 0x1e1   :  { %v775_v0 = vpop.xlane.xlu1 %774  ;;  %v2240_v30 = vmul.f32 0.015625, %v611_v59 }
 0x1e2   :  { %v867_v8 = vmul.f32 0.015625, %v775_v0 }
 0x1e3   :  { %v898_v37 = vmul.f32 %v2240_v30, %v2240_v30 }
 0x1e4   :  { %v931_v57 = vsub.f32 %v867_v8, %v899_v19  ;;  %v659_v13 = vpop.xlane.xlu0 %658  ;;  %v995_v8 = vsub.f32 %v1848_v21, %v707_v1 }
 0x1e5   :  { %v823_v14 = vpop.xlane.xlu1 %822  ;;  %v2244_v41 = vmul.f32 0.015625, %v659_v13 }
 0x1e6   :  { %v963_v44 = vmax.f32 %v931_v57, 0.0  ;;  %v883_v56 = vmul.f32 0.015625, %v823_v14  ;;  %v2253_v14 = vld [vmem:[#allocation8] ss:$0 sm:$0xff] }
 0x1e7   :  { %v914_v52 = vmul.f32 %v2244_v41, %v2244_v41 }
 0x1e8   :  { %v1027_v12 = vadd.f32 1e-12, %v963_v44  ;;  %v947_v32 = vsub.f32 %v883_v56, %v915_v24  ;;  %v772_v40 = vpop.xlane.xlu0 %771 }
 0x1e9   :  { %v620_v3 = vpop.xlane.xlu1 %619  ;;  %v866_v58 = vmul.f32 0.015625, %v772_v40 }
 0x1ea   :  { %1462 = vrsqrt.f32 %v1027_v12  ;;  %v979_v46 = vmax.f32 %v947_v32, 0.0  ;;  %v2248_v0 = vmul.f32 0.015625, %v620_v3 }
 0x1eb   :  { %v930_v2 = vsub.f32 %v866_v58, %v898_v37  ;;  %v2259_v37 = vld [vmem:[#allocation10] ss:$0 sm:$0xff]  ;;  %v1011_v58 = vsub.f32 %v1850_v22, %v723_v6 }
 0x1ec   :  { %v1043_v48 = vadd.f32 1e-12, %v979_v46  ;;  %v820_v49 = vpop.xlane.xlu0 %819  ;;  %v901_v3 = vmul.f32 %v2248_v0, %v2248_v0 }
 0x1ed   :  { %v962_v63 = vmax.f32 %v930_v2, 0.0  ;;  %v668_v4 = vpop.xlane.xlu1 %667  ;;  %v882_v31 = vmul.f32 0.015625, %v820_v49 }
 0x1ee   :  { %1464 = vrsqrt.f32 %v1043_v48  ;;  %v2263_v21 = vmul.f32 0.015625, %v668_v4  ;;  %v994_v4 = vsub.f32 %v1852_v23, %v2240_v30 }
 0x1ef   :  { %v1026_v51 = vadd.f32 1e-12, %v962_v63  ;;  %v946_v7 = vsub.f32 %v882_v31, %v914_v52 }
 0x1f0   :  { %v665_v17 = vpop.xlane.xlu0 %664  ;;  %v917_v22 = vmul.f32 %v2263_v21, %v2263_v21 }
 0x1f1   :  { %1466 = vrsqrt.f32 %v1026_v51  ;;  %v978_v5 = vmax.f32 %v946_v7, 0.0  ;;  %v617_v59 = vpop.xlane.xlu1 %616  ;;  %v2255_v24 = vmul.f32 0.015625, %v665_v17 }
 0x1f2   :  { %v2250_v19 = vmul.f32 0.015625, %v617_v59 }
 0x1f3   :  { %v1042_v57 = vadd.f32 1e-12, %v978_v5  ;;  %v916_v49 = vmul.f32 %v2255_v24, %v2255_v24 }
 0x1f4   :  { %v1463_v13 = vpop.eup %1462  ;;  %v778_v44 = vpop.xlane.xlu0 %777  ;;  %v900_v12 = vmul.f32 %v2250_v19, %v2250_v19 }
 0x1f5   :  { %v1091_v56 = vmul.f32 %v1463_v13, %v995_v8  ;;  %1468 = vrsqrt.f32 %v1042_v57  ;;  %v781_v32 = vpop.xlane.xlu1 %780  ;;  %v868_v40 = vmul.f32 0.015625, %v778_v44 }
 0x1f6   :  { %v869_v1 = vmul.f32 0.015625, %v781_v32 }
 0x1f7   :  { %v1130_v46 = vmul.f32 %v2253_v14, %v1091_v56  ;;  %v932_v2 = vsub.f32 %v868_v40, %v900_v12 }
 0x1f8   :  { %v1465_v48 = vpop.eup %1464  ;;  %v933_v52 = vsub.f32 %v869_v1, %v901_v3  ;;  %v826_v63 = vpop.xlane.xlu0 %825  ;;  %v1010_v1 = vsub.f32 %v1874_v36, %v2244_v41 }
 0x1f9   :  { %v1169_v31 = vadd.f32 %v2259_v37, %v1130_v46  ;;  %v1107_v51 = vmul.f32 %v1465_v48, %v1011_v58  ;;  %v964_v7 = vmax.f32 %v932_v2, 0.0  ;;  %v829_v17 = vpop.xlane.xlu1 %828  ;;  %v884_v5 = vmul.f32 0.015625, %v826_v63 }
 0x1fa   :  { %v965_v6 = vmax.f32 %v933_v52, 0.0  ;;  %v885_v59 = vmul.f32 0.015625, %v829_v17 }
 0x1fb   :  { %v1467_v8 = vpop.eup %1466  ;;  %1201 = vst.msk [vmem:[#allocation11 + $0x8] sm:$0xff] %vm608_vm1, %v1169_v31  ;;  %v1146_v57 = vmul.f32 %v2253_v14, %v1107_v51  ;;  %v1028_v13 = vadd.f32 1e-12, %v964_v7  ;;  %v948_v44 = vsub.f32 %v884_v5, %v916_v49 }
 0x1fc   :  { %v1090_v56 = vmul.f32 %v1467_v8, %v994_v4  ;;  %v1029_v12 = vadd.f32 1e-12, %v965_v6  ;;  %v949_v32 = vsub.f32 %v885_v59, %v917_v22  ;;  %v623_v40 = vpop.xlane.xlu0 %622  ;;  %v996_v8 = vsub.f32 %v1941_v28, %v2250_v19 }
 0x1fd   :  { %v1185_v3 = vadd.f32 %v2259_v37, %v1146_v57  ;;  %1470 = vrsqrt.f32 %v1028_v13  ;;  %v980_v23 = vmax.f32 %v948_v44, 0.0  ;;  %v626_v30 = vpop.xlane.xlu1 %625  ;;  %v2282_v51 = vmul.f32 0.015625, %v623_v40 }
 0x1fe   :  { %v1129_v58 = vmul.f32 %v2253_v14, %v1090_v56  ;;  %1472 = vrsqrt.f32 %v1029_v12  ;;  %v981_v46 = vmax.f32 %v949_v32, 0.0  ;;  %v2286_v41 = vmul.f32 0.015625, %v626_v30 }
 0x1ff   :  { %v1469_v2 = vpop.eup %1468  ;;  %1217 = vst.msk [vmem:[#allocation11 + $0x88] sm:$0xff] %vm608_vm1, %v1185_v3  ;;  %v1044_v48 = vadd.f32 1e-12, %v980_v23  ;;  %v902_v4 = vmul.f32 %v2282_v51, %v2282_v51  ;;  %v997_v12 = vsub.f32 %v1907_v61, %v2248_v0  ;;  %v1012_v3 = vsub.f32 %v1943_v29, %v2255_v24 }
 0x200   :  { %v1168_v49 = vadd.f32 %v2259_v37, %v1129_v58  ;;  %v1106_v52 = vmul.f32 %v1469_v2, %v1010_v1  ;;  %v1045_v63 = vadd.f32 1e-12, %v981_v46  ;;  %v671_v31 = vpop.xlane.xlu0 %670  ;;  %v903_v57 = vmul.f32 %v2286_v41, %v2286_v41 }
 0x201   :  { %1474 = vrsqrt.f32 %v1044_v48  ;;  %v674_v7 = vpop.xlane.xlu1 %673  ;;  %v2291_v22 = vmul.f32 0.015625, %v671_v31  ;;  %v1013_v29 = vsub.f32 %v1923_v15, %v2263_v21 }
 0x202   :  { %1200 = vst.msk [vmem:[#allocation11] sm:$0xff] %vm608_vm1, %v1168_v49  ;;  %v1145_v36 = vmul.f32 %v2253_v14, %v1106_v52  ;;  %1476 = vrsqrt.f32 %v1045_v63  ;;  %v2298_v13 = vmul.f32 0.015625, %v674_v7 }
 0x203   :  { %v918_v28 = vmul.f32 %v2291_v22, %v2291_v22 }
 0x204   :  { %v1184_v17 = vadd.f32 %v2259_v37, %v1145_v36  ;;  %v784_v5 = vpop.xlane.xlu0 %783  ;;  %v919_v61 = vmul.f32 %v2298_v13, %v2298_v13 }
 0x205   :  { %v787_v6 = vpop.xlane.xlu1 %786  ;;  %v870_v59 = vmul.f32 0.015625, %v784_v5 }
 0x206   :  { %1216 = vst.msk [vmem:[#allocation11 + $0x80] sm:$0xff] %vm608_vm1, %v1184_v17  ;;  %v871_v44 = vmul.f32 0.015625, %v787_v6 }
 0x207   :  { %v1471_v56 = vpop.eup %1470  ;;  %v934_v32 = vsub.f32 %v870_v59, %v902_v4 }
 0x208   :  { %v1473_v40 = vpop.eup %1472  ;;  %v1092_v23 = vmul.f32 %v1471_v56, %v996_v8  ;;  %v935_v30 = vsub.f32 %v871_v44, %v903_v57  ;;  %v832_v1 = vpop.xlane.xlu0 %831 }
 0x209   :  { %v1093_v58 = vmul.f32 %v1473_v40, %v997_v12  ;;  %v966_v19 = vmax.f32 %v934_v32, 0.0  ;;  %v835_v46 = vpop.xlane.xlu1 %834  ;;  %v886_v2 = vmul.f32 0.015625, %v832_v1 }
 0x20a   :  { %v1131_v48 = vmul.f32 %v2253_v14, %v1092_v23  ;;  %v967_v0 = vmax.f32 %v935_v30, 0.0  ;;  %v887_v49 = vmul.f32 0.015625, %v835_v46 }
 0x20b   :  { %v1475_v52 = vpop.eup %1474  ;;  %v1132_v24 = vmul.f32 %v2253_v14, %v1093_v58  ;;  %v1030_v63 = vadd.f32 1e-12, %v966_v19  ;;  %v950_v31 = vsub.f32 %v886_v2, %v918_v28 }
 0x20c   :  { %v1477_v7 = vpop.eup %1476  ;;  %v1170_v36 = vadd.f32 %v2259_v37, %v1131_v48  ;;  %v1108_v17 = vmul.f32 %v1475_v52, %v1012_v3  ;;  %v1031_v5 = vadd.f32 1e-12, %v967_v0  ;;  %v951_v4 = vsub.f32 %v887_v49, %v919_v61  ;;  %v629_v6 = vpop.xlane.xlu0 %628 }
 0x20d   :  { %v1171_v59 = vadd.f32 %v2259_v37, %v1132_v24  ;;  %v1109_v8 = vmul.f32 %v1477_v7, %v1013_v29  ;;  %1478 = vrsqrt.f32 %v1030_v63  ;;  %v982_v57 = vmax.f32 %v950_v31, 0.0  ;;  %v632_v44 = vpop.xlane.xlu1 %631 }
 0x20e   :  { %1202 = vst.msk [vmem:[#allocation11 + $0x10] sm:$0xff] %vm608_vm1, %v1170_v36  ;;  %v1147_v15 = vmul.f32 %v2253_v14, %v1108_v17  ;;  %1480 = vrsqrt.f32 %v1031_v5  ;;  %v983_v21 = vmax.f32 %v951_v4, 0.0  ;;  %v2320_v30 = vmul.f32 0.015625, %v629_v6 }
 0x20f   :  { %1203 = vst.msk [vmem:[#allocation11 + $0x18] sm:$0xff] %vm608_vm1, %v1171_v59  ;;  %v1148_v56 = vmul.f32 %v2253_v14, %v1109_v8  ;;  %v1046_v12 = vadd.f32 1e-12, %v982_v57  ;;  %v2323_v58 = vmul.f32 0.015625, %v632_v44  ;;  %v998_v61 = vsub.f32 %v2008_v10, %v2282_v51 }
 0x210   :  { %v1186_v32 = vadd.f32 %v2259_v37, %v1147_v15  ;;  %v1047_v40 = vadd.f32 1e-12, %v983_v21  ;;  %v677_v3 = vpop.xlane.xlu0 %676  ;;  %v904_v19 = vmul.f32 %v2320_v30, %v2320_v30  ;;  %v999_v24 = vsub.f32 %v2006_v9, %v2286_v41 }
 0x211   :  { %v1187_v23 = vadd.f32 %v2259_v37, %v1148_v56  ;;  %1482 = vrsqrt.f32 %v1046_v12  ;;  %v680_v1 = vpop.xlane.xlu1 %679  ;;  %v2328_v46 = vmul.f32 0.015625, %v677_v3  ;;  %v905_v0 = vmul.f32 %v2323_v58, %v2323_v58 }
 0x212   :  { %1218 = vst.msk [vmem:[#allocation11 + $0x90] sm:$0xff] %vm608_vm1, %v1186_v32  ;;  %1484 = vrsqrt.f32 %v1047_v40  ;;  %v2334_v49 = vmul.f32 0.015625, %v680_v1  ;;  %v1014_v7 = vsub.f32 %v2024_v20, %v2291_v22  ;;  %v1015_v20 = vsub.f32 %v2028_v16, %v2298_v13 }
 0x213   :  { %1219 = vst.msk [vmem:[#allocation11 + $0x98] sm:$0xff] %vm608_vm1, %v1187_v23  ;;  %v920_v10 = vmul.f32 %v2328_v46, %v2328_v46 }
 0x214   :  { %v790_v28 = vpop.xlane.xlu0 %789  ;;  %v921_v9 = vmul.f32 %v2334_v49, %v2334_v49 }
 0x215   :  { %v793_v2 = vpop.xlane.xlu1 %792  ;;  %v872_v48 = vmul.f32 0.015625, %v790_v28 }
 0x216   :  { %v873_v52 = vmul.f32 0.015625, %v793_v2 }
 0x217   :  { %v1479_v29 = vpop.eup %1478  ;;  %v936_v63 = vsub.f32 %v872_v48, %v904_v19 }
 0x218   :  { %v1481_v31 = vpop.eup %1480  ;;  %v1094_v36 = vmul.f32 %v1479_v29, %v998_v61  ;;  %v937_v17 = vsub.f32 %v873_v52, %v905_v0  ;;  %v838_v5 = vpop.xlane.xlu0 %837 }
 0x219   :  { %v1095_v4 = vmul.f32 %v1481_v31, %v999_v24  ;;  %v968_v51 = vmax.f32 %v936_v63, 0.0  ;;  %v841_v6 = vpop.xlane.xlu1 %840  ;;  %v888_v59 = vmul.f32 0.015625, %v838_v5 }
 0x21a   :  { %v1133_v8 = vmul.f32 %v2253_v14, %v1094_v36  ;;  %v969_v41 = vmax.f32 %v937_v17, 0.0  ;;  %v889_v57 = vmul.f32 0.015625, %v841_v6 }
 0x21b   :  { %v1483_v44 = vpop.eup %1482  ;;  %v1134_v22 = vmul.f32 %v2253_v14, %v1095_v4  ;;  %v1032_v15 = vadd.f32 1e-12, %v968_v51  ;;  %v952_v21 = vsub.f32 %v888_v59, %v920_v10  ;;  %v1000_v51 = vsub.f32 %v2066_v55, %v2320_v30 }
 0x21c   :  { %v1485_v56 = vpop.eup %1484  ;;  %v1172_v12 = vadd.f32 %v2259_v37, %v1133_v8  ;;  %v1110_v32 = vmul.f32 %v1483_v44, %v1014_v7  ;;  %v1033_v40 = vadd.f32 1e-12, %v969_v41  ;;  %v953_v3 = vsub.f32 %v889_v57, %v921_v9  ;;  %v635_v23 = vpop.xlane.xlu0 %634 }
 0x21d   :  { %v1173_v1 = vadd.f32 %v2259_v37, %v1134_v22  ;;  %v1111_v28 = vmul.f32 %v1485_v56, %v1015_v20  ;;  %1486 = vrsqrt.f32 %v1032_v15  ;;  %v984_v19 = vmax.f32 %v952_v21, 0.0  ;;  %v638_v2 = vpop.xlane.xlu1 %637 }
 0x21e   :  { %1204 = vst.msk [vmem:[#allocation11 + $0x20] sm:$0xff] %vm608_vm1, %v1172_v12  ;;  %v1149_v16 = vmul.f32 %v2253_v14, %v1110_v32  ;;  %1488 = vrsqrt.f32 %v1033_v40  ;;  %v985_v13 = vmax.f32 %v953_v3, 0.0  ;;  %v2356_v63 = vmul.f32 0.015625, %v635_v23 }
 0x21f   :  { %1205 = vst.msk [vmem:[#allocation11 + $0x28] sm:$0xff] %vm608_vm1, %v1173_v1  ;;  %v1150_v48 = vmul.f32 %v2253_v14, %v1111_v28  ;;  %v1048_v61 = vadd.f32 1e-12, %v984_v19  ;;  %v2359_v7 = vmul.f32 0.015625, %v638_v2  ;;  %v1001_v41 = vsub.f32 %v2072_v62, %v2323_v58 }
 0x220   :  { %v1188_v0 = vadd.f32 %v2259_v37, %v1149_v16  ;;  %v1049_v52 = vadd.f32 1e-12, %v985_v13  ;;  %v683_v29 = vpop.xlane.xlu0 %682  ;;  %v906_v17 = vmul.f32 %v2356_v63, %v2356_v63  ;;  %v1016_v20 = vsub.f32 %v2076_v27, %v2328_v46 }
 0x221   :  { %v1189_v24 = vadd.f32 %v2259_v37, %v1150_v48  ;;  %1490 = vrsqrt.f32 %v1048_v61  ;;  %v686_v31 = vpop.xlane.xlu1 %685  ;;  %v2364_v5 = vmul.f32 0.015625, %v683_v29  ;;  %v907_v6 = vmul.f32 %v2359_v7, %v2359_v7 }
 0x222   :  { %1220 = vst.msk [vmem:[#allocation11 + $0xa0] sm:$0xff] %vm608_vm1, %v1188_v0  ;;  %1492 = vrsqrt.f32 %v1049_v52  ;;  %v2370_v59 = vmul.f32 0.015625, %v686_v31  ;;  %v1017_v27 = vsub.f32 %v2080_v39, %v2334_v49 }
 0x223   :  { %1221 = vst.msk [vmem:[#allocation11 + $0xa8] sm:$0xff] %vm608_vm1, %v1189_v24  ;;  %v922_v55 = vmul.f32 %v2364_v5, %v2364_v5 }
 0x224   :  { %v796_v36 = vpop.xlane.xlu0 %795  ;;  %v923_v62 = vmul.f32 %v2370_v59, %v2370_v59 }
 0x225   :  { %v799_v4 = vpop.xlane.xlu1 %798  ;;  %v874_v10 = vmul.f32 0.015625, %v796_v36 }
 0x226   :  { %v875_v8 = vmul.f32 0.015625, %v799_v4 }
 0x227   :  { %v1487_v9 = vpop.eup %1486  ;;  %v938_v57 = vsub.f32 %v874_v10, %v906_v17 }
 0x228   :  { %v1489_v44 = vpop.eup %1488  ;;  %v1096_v22 = vmul.f32 %v1487_v9, %v1000_v51  ;;  %v939_v15 = vsub.f32 %v875_v8, %v907_v6  ;;  %v844_v21 = vpop.xlane.xlu0 %843 }
 0x229   :  { %v1097_v56 = vmul.f32 %v1489_v44, %v1001_v41  ;;  %v970_v30 = vmax.f32 %v938_v57, 0.0  ;;  %v847_v12 = vpop.xlane.xlu1 %846  ;;  %v890_v32 = vmul.f32 0.015625, %v844_v21 }
 0x22a   :  { %v1135_v40 = vmul.f32 %v2253_v14, %v1096_v22  ;;  %v971_v58 = vmax.f32 %v939_v15, 0.0  ;;  %v891_v3 = vmul.f32 0.015625, %v847_v12  ;;  %v1002_v15 = vsub.f32 %v2104_v60, %v2356_v63 }
 0x22b   :  { %v1491_v23 = vpop.eup %1490  ;;  %v1136_v46 = vmul.f32 %v2253_v14, %v1097_v56  ;;  %v1034_v1 = vadd.f32 1e-12, %v970_v30  ;;  %v954_v28 = vsub.f32 %v890_v32, %v922_v55  ;;  %v1003_v12 = vsub.f32 %v2108_v35, %v2359_v7 }
 0x22c   :  { %v1493_v19 = vpop.eup %1492  ;;  %v1174_v2 = vadd.f32 %v2259_v37, %v1135_v40  ;;  %v1112_v16 = vmul.f32 %v1491_v23, %v1016_v20  ;;  %v1035_v13 = vadd.f32 1e-12, %v971_v58  ;;  %v955_v48 = vsub.f32 %v891_v3, %v923_v62  ;;  %v641_v61 = vpop.xlane.xlu0 %640 }
 0x22d   :  { %v1175_v0 = vadd.f32 %v2259_v37, %v1136_v46  ;;  %v1113_v52 = vmul.f32 %v1493_v19, %v1017_v27  ;;  %1494 = vrsqrt.f32 %v1034_v1  ;;  %v986_v29 = vmax.f32 %v954_v28, 0.0  ;;  %v644_v24 = vpop.xlane.xlu1 %643 }
 0x22e   :  { %1206 = vst.msk [vmem:[#allocation11 + $0x30] sm:$0xff] %vm608_vm1, %v1174_v2  ;;  %v1151_v39 = vmul.f32 %v2253_v14, %v1112_v16  ;;  %1496 = vrsqrt.f32 %v1035_v13  ;;  %v987_v49 = vmax.f32 %v955_v48, 0.0  ;;  %v2392_v6 = vmul.f32 0.015625, %v641_v61 }
 0x22f   :  { %1207 = vst.msk [vmem:[#allocation11 + $0x38] sm:$0xff] %vm608_vm1, %v1175_v0  ;;  %v1152_v31 = vmul.f32 %v2253_v14, %v1113_v52  ;;  %v1050_v36 = vadd.f32 1e-12, %v986_v29  ;;  %v2395_v9 = vmul.f32 0.015625, %v644_v24  ;;  %v1018_v62 = vsub.f32 %v2112_v25, %v2364_v5 }
 0x230   :  { %v1190_v17 = vadd.f32 %v2259_v37, %v1151_v39  ;;  %v1051_v4 = vadd.f32 1e-12, %v987_v49  ;;  %v689_v10 = vpop.xlane.xlu0 %688  ;;  %v908_v57 = vmul.f32 %v2392_v6, %v2392_v6  ;;  %v1019_v25 = vsub.f32 %v2116_v38, %v2370_v59 }
 0x231   :  { %v1191_v51 = vadd.f32 %v2259_v37, %v1152_v31  ;;  %1498 = vrsqrt.f32 %v1050_v36  ;;  %v692_v8 = vpop.xlane.xlu1 %691  ;;  %v2400_v44 = vmul.f32 0.015625, %v689_v10  ;;  %v909_v21 = vmul.f32 %v2395_v9, %v2395_v9 }
 0x232   :  { %1222 = vst.msk [vmem:[#allocation11 + $0xb0] sm:$0xff] %vm608_vm1, %v1190_v17  ;;  %1500 = vrsqrt.f32 %v1051_v4  ;;  %v2406_v56 = vmul.f32 0.015625, %v692_v8 }
 0x233   :  { %1223 = vst.msk [vmem:[#allocation11 + $0xb8] sm:$0xff] %vm608_vm1, %v1191_v51  ;;  %v924_v60 = vmul.f32 %v2400_v44, %v2400_v44 }
 0x234   :  { %v802_v41 = vpop.xlane.xlu0 %801  ;;  %v925_v35 = vmul.f32 %v2406_v56, %v2406_v56 }
 0x235   :  { %v805_v20 = vpop.xlane.xlu1 %804  ;;  %v876_v22 = vmul.f32 0.015625, %v802_v41 }
 0x236   :  { %v877_v55 = vmul.f32 0.015625, %v805_v20 }
 0x237   :  { %v1495_v30 = vpop.eup %1494  ;;  %v940_v32 = vsub.f32 %v876_v22, %v908_v57 }
 0x238   :  { %v1497_v40 = vpop.eup %1496  ;;  %v1098_v58 = vmul.f32 %v1495_v30, %v1002_v15  ;;  %v941_v3 = vsub.f32 %v877_v55, %v909_v21  ;;  %v850_v23 = vpop.xlane.xlu0 %849 }
 0x239   :  { %v1099_v27 = vmul.f32 %v1497_v40, %v1003_v12  ;;  %v972_v63 = vmax.f32 %v940_v32, 0.0  ;;  %v853_v46 = vpop.xlane.xlu1 %852  ;;  %v892_v1 = vmul.f32 0.015625, %v850_v23  ;;  %v1004_v32 = vsub.f32 %v2140_v34, %v2392_v6 }
 0x23a   :  { %v1137_v28 = vmul.f32 %v2253_v14, %v1098_v58  ;;  %v973_v7 = vmax.f32 %v941_v3, 0.0  ;;  %v893_v19 = vmul.f32 0.015625, %v853_v46  ;;  %v1005_v23 = vsub.f32 %v2144_v11, %v2395_v9 }
 0x23b   :  { %v1499_v2 = vpop.eup %1498  ;;  %v1138_v5 = vmul.f32 %v2253_v14, %v1099_v27  ;;  %v1036_v16 = vadd.f32 1e-12, %v972_v63  ;;  %v956_v13 = vsub.f32 %v892_v1, %v924_v60  ;;  %v1020_v63 = vsub.f32 %v2148_v47, %v2400_v44 }
 0x23c   :  { %v1501_v48 = vpop.eup %1500  ;;  %v1176_v61 = vadd.f32 %v2259_v37, %v1137_v28  ;;  %v1114_v0 = vmul.f32 %v1499_v2, %v1018_v62  ;;  %v1037_v52 = vadd.f32 1e-12, %v973_v7  ;;  %v957_v29 = vsub.f32 %v893_v19, %v925_v35  ;;  %v647_v24 = vpop.xlane.xlu0 %646 }
 0x23d   :  { %v1177_v39 = vadd.f32 %v2259_v37, %v1138_v5  ;;  %v1115_v49 = vmul.f32 %v1501_v48, %v1019_v25  ;;  %1502 = vrsqrt.f32 %v1036_v16  ;;  %v988_v31 = vmax.f32 %v956_v13, 0.0  ;;  %v650_v36 = vpop.xlane.xlu1 %649 }
 0x23e   :  { %1208 = vst.msk [vmem:[#allocation11 + $0x40] sm:$0xff] %vm608_vm1, %v1176_v61  ;;  %v1153_v38 = vmul.f32 %v2253_v14, %v1114_v0  ;;  %1504 = vrsqrt.f32 %v1037_v52  ;;  %v989_v59 = vmax.f32 %v957_v29, 0.0  ;;  %v2428_v57 = vmul.f32 0.015625, %v647_v24 }
 0x23f   :  { %1209 = vst.msk [vmem:[#allocation11 + $0x48] sm:$0xff] %vm608_vm1, %v1177_v39  ;;  %v1154_v17 = vmul.f32 %v2253_v14, %v1115_v49  ;;  %v1052_v4 = vadd.f32 1e-12, %v988_v31  ;;  %v2431_v22 = vmul.f32 0.015625, %v650_v36  ;;  %v1021_v47 = vsub.f32 %v2152_v53, %v2406_v56 }
 0x240   :  { %v1192_v10 = vadd.f32 %v2259_v37, %v1153_v38  ;;  %v1053_v51 = vadd.f32 1e-12, %v989_v59  ;;  %v695_v8 = vpop.xlane.xlu0 %694  ;;  %v910_v21 = vmul.f32 %v2428_v57, %v2428_v57 }
 0x241   :  { %v1193_v41 = vadd.f32 %v2259_v37, %v1154_v17  ;;  %1506 = vrsqrt.f32 %v1052_v4  ;;  %v698_v20 = vpop.xlane.xlu1 %697  ;;  %v2436_v55 = vmul.f32 0.015625, %v695_v8  ;;  %v911_v40 = vmul.f32 %v2431_v22, %v2431_v22 }
 0x242   :  { %1224 = vst.msk [vmem:[#allocation11 + $0xc0] sm:$0xff] %vm608_vm1, %v1192_v10  ;;  %1508 = vrsqrt.f32 %v1053_v51  ;;  %v2442_v62 = vmul.f32 0.015625, %v698_v20 }
 0x243   :  { %1225 = vst.msk [vmem:[#allocation11 + $0xc8] sm:$0xff] %vm608_vm1, %v1193_v41  ;;  %v926_v34 = vmul.f32 %v2436_v55, %v2436_v55 }
 0x244   :  { %v808_v15 = vpop.xlane.xlu0 %807  ;;  %v927_v11 = vmul.f32 %v2442_v62, %v2442_v62 }
 0x245   :  { %v811_v30 = vpop.xlane.xlu1 %810  ;;  %v878_v12 = vmul.f32 0.015625, %v808_v15 }
 0x246   :  { %v879_v58 = vmul.f32 0.015625, %v811_v30 }
 0x247   :  { %v1503_v3 = vpop.eup %1502  ;;  %v942_v27 = vsub.f32 %v878_v12, %v910_v21 }
 0x248   :  { %v1505_v60 = vpop.eup %1504  ;;  %v1100_v46 = vmul.f32 %v1503_v3, %v1004_v32  ;;  %v943_v1 = vsub.f32 %v879_v58, %v911_v40  ;;  %v856_v28 = vpop.xlane.xlu0 %855  ;;  %v1006_v40 = vsub.f32 %v2176_v26, %v2428_v57 }
 0x249   :  { %v1101_v35 = vmul.f32 %v1505_v60, %v1005_v23  ;;  %v974_v6 = vmax.f32 %v942_v27, 0.0  ;;  %v859_v7 = vpop.xlane.xlu1 %858  ;;  %v894_v19 = vmul.f32 0.015625, %v856_v28  ;;  %v1007_v60 = vsub.f32 %v2180_v42, %v2431_v22 }
 0x24a   :  { %v1139_v2 = vmul.f32 %v2253_v14, %v1100_v46  ;;  %v975_v9 = vmax.f32 %v943_v1, 0.0  ;;  %v895_v25 = vmul.f32 0.015625, %v859_v7  ;;  %v1022_v1 = vsub.f32 %v2184_v18, %v2436_v55 }
 0x24b   :  { %v1507_v5 = vpop.eup %1506  ;;  %v1140_v44 = vmul.f32 %v2253_v14, %v1101_v35  ;;  %v1038_v16 = vadd.f32 1e-12, %v974_v6  ;;  %v958_v13 = vsub.f32 %v894_v19, %v926_v34  ;;  %v1023_v18 = vsub.f32 %v2188_v54, %v2442_v62 }
 0x24c   :  { %v1509_v48 = vpop.eup %1508  ;;  %v1178_v61 = vadd.f32 %v2259_v37, %v1139_v2  ;;  %v1116_v0 = vmul.f32 %v1507_v5, %v1020_v63  ;;  %v1039_v52 = vadd.f32 1e-12, %v975_v9  ;;  %v959_v29 = vsub.f32 %v895_v25, %v927_v11  ;;  %v653_v24 = vpop.xlane.xlu0 %652 }
 0x24d   :  { %v1179_v39 = vadd.f32 %v2259_v37, %v1140_v44  ;;  %v1117_v49 = vmul.f32 %v1509_v48, %v1021_v47  ;;  %1510 = vrsqrt.f32 %v1038_v16  ;;  %v990_v31 = vmax.f32 %v958_v13, 0.0  ;;  %v656_v36 = vpop.xlane.xlu1 %655 }
 0x24e   :  { %1210 = vst.msk [vmem:[#allocation11 + $0x50] sm:$0xff] %vm608_vm1, %v1178_v61  ;;  %v1155_v53 = vmul.f32 %v2253_v14, %v1116_v0  ;;  %1512 = vrsqrt.f32 %v1039_v52  ;;  %v991_v56 = vmax.f32 %v959_v29, 0.0  ;;  %v2464_v8 = vmul.f32 0.015625, %v653_v24 }
 0x24f   :  { %1211 = vst.msk [vmem:[#allocation11 + $0x58] sm:$0xff] %vm608_vm1, %v1179_v39  ;;  %v1156_v38 = vmul.f32 %v2253_v14, %v1117_v49  ;;  %v1054_v59 = vadd.f32 1e-12, %v990_v31  ;;  %v721_v20 = vmul.f32 0.015625, %v656_v36 }
 0x250   :  { %v1194_v17 = vadd.f32 %v2259_v37, %v1155_v53  ;;  %v1055_v4 = vadd.f32 1e-12, %v991_v56  ;;  %v701_v10 = vpop.xlane.xlu0 %700  ;;  %v912_v21 = vmul.f32 %v2464_v8, %v2464_v8  ;;  %v1008_v36 = vsub.f32 %v2208_v45, %v2464_v8 }
 0x251   :  { %v1195_v51 = vadd.f32 %v2259_v37, %v1156_v38  ;;  %1514 = vrsqrt.f32 %v1054_v59  ;;  %v704_v41 = vpop.xlane.xlu1 %703  ;;  %v2470_v30 = vmul.f32 0.015625, %v701_v10  ;;  %v913_v58 = vmul.f32 %v721_v20, %v721_v20 }
 0x252   :  { %1226 = vst.msk [vmem:[#allocation11 + $0xd0] sm:$0xff] %vm608_vm1, %v1194_v17  ;;  %1516 = vrsqrt.f32 %v1055_v4  ;;  %v2474_v3 = vmul.f32 0.015625, %v704_v41  ;;  %v1009_v56 = vsub.f32 %v2212_v33, %v721_v20 }
 0x253   :  { %1227 = vst.msk [vmem:[#allocation11 + $0xd8] sm:$0xff] %vm608_vm1, %v1195_v51  ;;  %v928_v26 = vmul.f32 %v2470_v30, %v2470_v30  ;;  %v1024_v4 = vsub.f32 %v2216_v50, %v2470_v30 }
 0x254   :  { %v814_v15 = vpop.xlane.xlu0 %813  ;;  %v929_v42 = vmul.f32 %v2474_v3, %v2474_v3  ;;  %v1025_v41 = vsub.f32 %v2220_v43, %v2474_v3 }
 0x255   :  { %v817_v12 = vpop.xlane.xlu1 %816  ;;  %v880_v32 = vmul.f32 0.015625, %v814_v15 }
 0x256   :  { %v881_v23 = vmul.f32 0.015625, %v817_v12 }
 0x257   :  { %v1511_v27 = vpop.eup %1510  ;;  %v944_v63 = vsub.f32 %v880_v32, %v912_v21 }
 0x258   :  { %v1513_v46 = vpop.eup %1512  ;;  %v1102_v28 = vmul.f32 %v1511_v27, %v1006_v40  ;;  %v945_v35 = vsub.f32 %v881_v23, %v913_v58  ;;  %v862_v34 = vpop.xlane.xlu0 %861 }
 0x259   :  { %v1103_v6 = vmul.f32 %v1513_v46, %v1007_v60  ;;  %v976_v57 = vmax.f32 %v944_v63, 0.0  ;;  %v865_v7 = vpop.xlane.xlu1 %864  ;;  %v896_v19 = vmul.f32 0.015625, %v862_v34 }
 0x25a   :  { %v1141_v2 = vmul.f32 %v2253_v14, %v1102_v28  ;;  %v977_v22 = vmax.f32 %v945_v35, 0.0  ;;  %v897_v11 = vmul.f32 0.015625, %v865_v7 }
 0x25b   :  { %v1515_v9 = vpop.eup %1514  ;;  %v1142_v55 = vmul.f32 %v2253_v14, %v1103_v6  ;;  %v1040_v25 = vadd.f32 1e-12, %v976_v57  ;;  %v960_v5 = vsub.f32 %v896_v19, %v928_v26 }
 0x25c   :  { %v1517_v47 = vpop.eup %1516  ;;  %v1180_v44 = vadd.f32 %v2259_v37, %v1141_v2  ;;  %v1118_v16 = vmul.f32 %v1515_v9, %v1022_v1  ;;  %v1041_v13 = vadd.f32 1e-12, %v977_v22  ;;  %v961_v48 = vsub.f32 %v897_v11, %v929_v42 }
 0x25d   :  { %v1181_v61 = vadd.f32 %v2259_v37, %v1142_v55  ;;  %v1119_v0 = vmul.f32 %v1517_v47, %v1023_v18  ;;  %1518 = vrsqrt.f32 %v1040_v25  ;;  %v992_v52 = vmax.f32 %v960_v5, 0.0 }
 0x25e   :  { %1212 = vst.msk [vmem:[#allocation11 + $0x60] sm:$0xff] %vm608_vm1, %v1180_v44  ;;  %v1157_v29 = vmul.f32 %v2253_v14, %v1118_v16  ;;  %1520 = vrsqrt.f32 %v1041_v13  ;;  %v993_v54 = vmax.f32 %v961_v48, 0.0 }
 0x25f   :  { %1213 = vst.msk [vmem:[#allocation11 + $0x68] sm:$0xff] %vm608_vm1, %v1181_v61  ;;  %v1158_v62 = vmul.f32 %v2253_v14, %v1119_v0  ;;  %v1056_v24 = vadd.f32 1e-12, %v992_v52 }
 0x260   :  { %v1196_v39 = vadd.f32 %v2259_v37, %v1157_v29  ;;  %v1057_v49 = vadd.f32 1e-12, %v993_v54 }
 0x261   :  { %v1197_v31 = vadd.f32 %v2259_v37, %v1158_v62  ;;  %1522 = vrsqrt.f32 %v1056_v24 }
 0x262   :  { %1228 = vst.msk [vmem:[#allocation11 + $0xe0] sm:$0xff] %vm608_vm1, %v1196_v39  ;;  %1524 = vrsqrt.f32 %v1057_v49 }
 0x263   :  { %1229 = vst.msk [vmem:[#allocation11 + $0xe8] sm:$0xff] %vm608_vm1, %v1197_v31 }
 0x267   :  { %v1519_v53 = vpop.eup %1518 }
 0x268   :  { %v1521_v38 = vpop.eup %1520  ;;  %v1104_v59 = vmul.f32 %v1519_v53, %v1008_v36 }
 0x269   :  { %v1105_v17 = vmul.f32 %v1521_v38, %v1009_v56 }
 0x26a   :  { %v1143_v10 = vmul.f32 %v2253_v14, %v1104_v59 }
 0x26b   :  { %v1523_v51 = vpop.eup %1522  ;;  %v1144_v15 = vmul.f32 %v2253_v14, %v1105_v17 }
 0x26c   :  { %v1525_v21 = vpop.eup %1524  ;;  %v1182_v45 = vadd.f32 %v2259_v37, %v1143_v10  ;;  %v1120_v8 = vmul.f32 %v1523_v51, %v1024_v4 }
 0x26d   :  { %v1183_v33 = vadd.f32 %v2259_v37, %v1144_v15  ;;  %v1121_v20 = vmul.f32 %v1525_v21, %v1025_v41 }
 0x26e   :  { %1214 = vst.msk [vmem:[#allocation11 + $0x70] sm:$0xff] %vm608_vm1, %v1182_v45  ;;  %v1159_v12 = vmul.f32 %v2253_v14, %v1120_v8 }
 0x26f   :  { %1215 = vst.msk [vmem:[#allocation11 + $0x78] sm:$0xff] %vm608_vm1, %v1183_v33  ;;  %v1160_v50 = vmul.f32 %v2253_v14, %v1121_v20 }
 0x270   :  { %v1198_v43 = vadd.f32 %v2259_v37, %v1159_v12 }
 0x271   :  { %v1199_v30 = vadd.f32 %v2259_v37, %v1160_v50 }
 0x272   :  { %1230 = vst.msk [vmem:[#allocation11 + $0xf0] sm:$0xff] %vm608_vm1, %v1198_v43 }
 0x273   :  { %1231 = vst.msk [vmem:[#allocation11 + $0xf8] sm:$0xff] %vm608_vm1, %v1199_v30 }
 0x274   :  { %1647 = shalt.err (!%p1644_p2)
}
 0x275   :  { %s1648_s10 = scalar_lea.hbm %s2537_s5, 4096 }
 0x276   :  { %p1649_p3 = scmp.ne.s32.totalorder %s2537_s5, %s1648_s10  ;;  %p1652_p4 = scmp.lt.u32.totalorder %s1648_s10, %s2537_s5 }
 0x278   :  { %p1654_p5 = pnand %p1652_p4, %p1649_p3 }
 0x27a   :  { %1657 = shalt.err (!%p1654_p5)
}
 0x27b   :  { %1243 = dma.vmem_to_hbm [thread:$0]  %s1238_s3, 4096, %s2537_s5, [#allocation4], %s1668_s30, %s1668_s30, %s1669_s6  }
 0x27c   :  { %1664 = dma.done.wait [#allocation4], 4096  }
 0x27d   :  { %1665 = vsyncadd [#allocation4], 4294963200 }
 0x27e   :  { %1247 = vsyncpa [#allocation3], 1 }
 0x27f   :  { %1248 = vsyncpa [#allocation6], 1 }
 0x280   :  { %1249 = vsyncpa [#allocation9], 1 }
 0x281   :  { %1250 = vsyncpa [#allocation4], 1 }

</bundles_post_ra>
